<compile_context>
chip_gen: v5e
topology: v5e:2x2
jax: 0.10.0
libtpu: 0.0.40
codegen_flags: <defaults>
</compile_context>

<pallas_src>
import functools

import jax
import jax.numpy as jnp
from jax.experimental import pallas as pl
from jax.experimental.pallas import tpu as pltpu


def _round_up(x, m):
    return ((x + m - 1) // m) * m


# ------------------------------ fused Pallas kernel ---------------------------

def _basic_block_kernel(xps_ref, w1_ref, w2_ref, ws_ref,
                        s1_ref, b1_ref, s2_ref, b2_ref, ss_ref, bs_ref,
                        out_ref, h1pad_ref, *,
                        stride, Ho, Wo, Cin, C1p, C2p):
    """One grid step == one image of the batch.

    xps_ref : (stride*stride, Hp, Wp, Cin) f32  stride-phase split, padded input
    w1_ref  : (9, Cin, C1p)  bf16               conv1, one (Cin, C1p) slab per tap
    w2_ref  : (9, C1p, C2p)  bf16               conv2
    ws_ref  : (Cin, C2p)     bf16               1x1 shortcut (identity if no projection)
    s*/b*   : (1, Cp)        f32                folded BatchNorm scale / bias
    out_ref : (1, Ho*Wo, C2p)                   lane-dense output slab
    h1pad   : (Ho+2, Wo+2, C1p) f32 VMEM        zero-bordered intermediate for conv2
    """
    s = stride
    M = Ho * Wo

    def tap(kh, kw):
        # Input window feeding conv tap (kh, kw): x_pad[s*i + kh, s*j + kw, :].
        ph = (kh % s) * s + (kw % s)
        r0, c0 = kh // s, kw // s
        a = xps_ref[ph, r0:r0 + Ho, c0:c0 + Wo, :]            # (Ho, Wo, Cin)
        return a.reshape(M, Cin).astype(jnp.bfloat16)

    # conv1 (3x3, stride s, pad 1) + BN1 + ReLU: 9 accumulating MXU matmuls.
    acc1 = jnp.zeros((M, C1p), jnp.float32)
    for kh in range(3):
        for kw in range(3):
            acc1 += jnp.dot(tap(kh, kw), w1_ref[kh * 3 + kw],
                            preferred_element_type=jnp.float32)
    h1 = jnp.maximum(acc1 * s1_ref[...] + b1_ref[...], 0.0)

    # Stage h1 in a zero-bordered VMEM scratch so conv2's taps are plain slices
    # (h1 never goes back to HBM).  Fully rewritten every step -> safe under
    # "parallel" grid semantics.
    h1pad_ref[...] = jnp.zeros_like(h1pad_ref)
    h1pad_ref[1:Ho + 1, 1:Wo + 1, :] = h1.reshape(Ho, Wo, C1p)

    # conv2 (3x3, stride 1, pad 1): 9 accumulating MXU matmuls over the scratch.
    acc2 = jnp.zeros((M, C2p), jnp.float32)
    for kh in range(3):
        for kw in range(3):
            a = h1pad_ref[kh:kh + Ho, kw:kw + Wo, :]
            a = a.reshape(M, C1p).astype(jnp.bfloat16)
            acc2 += jnp.dot(a, w2_ref[kh * 3 + kw],
                            preferred_element_type=jnp.float32)

    # Shortcut (1x1 conv stride s + BN, or identity): its input is exactly the
    # (kh, kw) == (1, 1) tap of the padded input.
    res = jnp.dot(tap(1, 1), ws_ref[...], preferred_element_type=jnp.float32)
    res = res * ss_ref[...] + bs_ref[...]

    # BN2 + residual add + final ReLU, fused.
    y = jnp.maximum(acc2 * s2_ref[...] + b2_ref[...] + res, 0.0)
    out_ref[0] = y.astype(out_ref.dtype)


# ----------------------------------- wrapper ----------------------------------

def _fold_bn(gamma, beta, mean, var, eps=1e-5):
    scale = gamma / jnp.sqrt(var + eps)
    bias = beta - mean * scale
    return scale.astype(jnp.float32), bias.astype(jnp.float32)


@functools.partial(jax.jit, static_argnums=(2,))
def basic_block_forward(x_nchw, params, stride):
    """Matches BasicBlock.forward (inference-mode BN). Input/output are NCHW."""
    x = jnp.transpose(x_nchw, (0, 2, 3, 1)).astype(jnp.float32)   # -> NHWC
    N, H, W, Cin = x.shape
    s = int(stride)
    Ho = (H + 2 - 3) // s + 1
    Wo = (W + 2 - 3) // s + 1
    M = Ho * Wo
    C1 = params["w1"].shape[-1]
    C2 = params["w2"].shape[-1]
    C1p = _round_up(C1, 128)          # lane-dense / MXU-native channel padding
    C2p = _round_up(C2, 128)

    # Stride-phase split of the zero-padded input (space-to-depth on the
    # stride).  Same total size as the input (no 9x im2col expansion).
    Hp = -(-(H + 2) // s)
    Wp = -(-(W + 2) // s)
    xp = jnp.pad(x, ((0, 0), (1, s * Hp - H - 1), (1, s * Wp - W - 1), (0, 0)))
    xps = xp.reshape(N, Hp, s, Wp, s, Cin).transpose(0, 2, 4, 1, 3, 5)
    xps = xps.reshape(N * s * s, Hp, Wp, Cin)

    # Weights: HWIO -> (tap, Cin, Cout), channel-padded, bf16 for the MXU.
    w1 = jnp.pad(params["w1"].reshape(9, Cin, C1),
                 ((0, 0), (0, 0), (0, C1p - C1))).astype(jnp.bfloat16)
    w2 = jnp.pad(params["w2"].reshape(9, C1, C2),
                 ((0, 0), (0, C1p - C1), (0, C2p - C2))).astype(jnp.bfloat16)

    s1, b1 = _fold_bn(*params["bn1"])
    s2, b2 = _fold_bn(*params["bn2"])
    if params["ws"] is not None:          # projection shortcut: 1x1 conv + BN
        ws = params["ws"].reshape(Cin, C2)
        ss, bs = _fold_bn(*params["bns"])
    else:                                  # identity shortcut (stride==1, Cin==C2)
        ws = jnp.eye(Cin, C2, dtype=jnp.float32)
        ss = jnp.ones((C2,), jnp.float32)
        bs = jnp.zeros((C2,), jnp.float32)
    ws = jnp.pad(ws, ((0, 0), (0, C2p - C2))).astype(jnp.bfloat16)

    def pad_vec(v, cp):
        return jnp.pad(v, (0, cp - v.shape[0]))[None, :].astype(jnp.float32)

    s1p, b1p = pad_vec(s1, C1p), pad_vec(b1, C1p)
    s2p, b2p = pad_vec(s2, C2p), pad_vec(b2, C2p)
    ssp, bsp = pad_vec(ss, C2p), pad_vec(bs, C2p)

    kernel = functools.partial(
        _basic_block_kernel,
        stride=s, Ho=Ho, Wo=Wo, Cin=Cin, C1p=C1p, C2p=C2p)

    flops = 2 * N * M * (9 * Cin * C1p + Cin * C2p + 9 * C1p * C2p)
    bytes_accessed = (xps.size * 4 + w1.size * 2 + w2.size * 2 + ws.size * 2
                      + N * M * C2p * 4)

    out = pl.pallas_call(
        kernel,
        out_shape=jax.ShapeDtypeStruct((N, M, C2p), jnp.float32),
        grid_spec=pltpu.PrefetchScalarGridSpec(
            num_scalar_prefetch=0,
            grid=(N,),
            in_specs=[
                pl.BlockSpec((s * s, Hp, Wp, Cin), lambda n: (n, 0, 0, 0)),
                pl.BlockSpec((9, Cin, C1p), lambda n: (0, 0, 0)),
                pl.BlockSpec((9, C1p, C2p), lambda n: (0, 0, 0)),
                pl.BlockSpec((Cin, C2p), lambda n: (0, 0)),
                pl.BlockSpec((1, C1p), lambda n: (0, 0)),
                pl.BlockSpec((1, C1p), lambda n: (0, 0)),
                pl.BlockSpec((1, C2p), lambda n: (0, 0)),
                pl.BlockSpec((1, C2p), lambda n: (0, 0)),
                pl.BlockSpec((1, C2p), lambda n: (0, 0)),
                pl.BlockSpec((1, C2p), lambda n: (0, 0)),
            ],
            out_specs=pl.BlockSpec((1, M, C2p), lambda n: (n, 0, 0)),
            scratch_shapes=[pltpu.VMEM((Ho + 2, Wo + 2, C1p), jnp.float32)],
        ),
        compiler_params=pltpu.CompilerParams(
            dimension_semantics=("parallel",)),   # batch shards across TCs (v7x)
        cost_estimate=pl.CostEstimate(
            flops=flops, transcendentals=0, bytes_accessed=bytes_accessed),
    )(xps, w1, w2, ws, s1p, b1p, s2p, b2p, ssp, bsp)

    out = out[:, :, :C2].reshape(N, Ho, Wo, C2)
    return jnp.transpose(out, (0, 3, 1, 2))       # -> NCHW


# --------------------------------- parameters ---------------------------------

def init_basic_block_params(key, input_ch, out_ch, stride):
    expansion = 1
    k = jax.random.split(key, 16)
    p = {}
    p["w1"] = 0.1 * jax.random.normal(k[0], (3, 3, input_ch, out_ch), jnp.float32)
    p["bn1"] = (1.0 + 0.1 * jax.random.normal(k[1], (out_ch,), jnp.float32),
                0.1 * jax.random.normal(k[2], (out_ch,), jnp.float32),
                0.1 * jax.random.normal(k[3], (out_ch,), jnp.float32),
                1.0 + 0.1 * jax.random.uniform(k[4], (out_ch,), jnp.float32))
    oc2 = out_ch * expansion
    p["w2"] = 0.1 * jax.random.normal(k[5], (3, 3, out_ch, oc2), jnp.float32)
    p["bn2"] = (1.0 + 0.1 * jax.random.normal(k[6], (oc2,), jnp.float32),
                0.1 * jax.random.normal(k[7], (oc2,), jnp.float32),
                0.1 * jax.random.normal(k[8], (oc2,), jnp.float32),
                1.0 + 0.1 * jax.random.uniform(k[9], (oc2,), jnp.float32))
    if stride != 1 or input_ch != expansion * out_ch:
        p["ws"] = 0.1 * jax.random.normal(k[10], (1, 1, input_ch, oc2), jnp.float32)
        p["bns"] = (1.0 + 0.1 * jax.random.normal(k[11], (oc2,), jnp.float32),
                    0.1 * jax.random.normal(k[12], (oc2,), jnp.float32),
                    0.1 * jax.random.normal(k[13], (oc2,), jnp.float32),
                    1.0 + 0.1 * jax.random.uniform(k[14], (oc2,), jnp.float32))
    else:
        p["ws"] = None
        p["bns"] = None
    return p


# ------------------------------ pure-JAX reference -----------------------------

def _ref_conv(x, w_hwio, stride, padding):
    return jax.lax.conv_general_dilated(
        x, w_hwio, window_strides=(stride, stride),
        padding=[(padding, padding), (padding, padding)],
        dimension_numbers=("NHWC", "HWIO", "NHWC"))


def reference_forward(x_nchw, params, stride):
    x = jnp.transpose(x_nchw, (0, 2, 3, 1)).astype(jnp.float32)
    s1, b1 = _fold_bn(*params["bn1"])
    h = jnp.maximum(_ref_conv(x, params["w1"], stride, 1) * s1 + b1, 0.0)
    s2, b2 = _fold_bn(*params["bn2"])
    h = _ref_conv(h, params["w2"], 1, 1) * s2 + b2
    if params["ws"] is not None:
        ss, bs = _fold_bn(*params["bns"])
        sc = _ref_conv(x, params["ws"], stride, 0) * ss + bs
    else:
        sc = x
    out = jnp.maximum(h + sc, 0.0)
    return jnp.transpose(out, (0, 3, 1, 2))


# ------------------------------------ main -------------------------------------

if __name__ == "__main__":
    key = jax.random.PRNGKey(0)
    k_x, k_p, k_x2, k_p2 = jax.random.split(key, 4)

    # Config A: projection shortcut (stride 2, channel change).
    N, Cin, H, W = 2, 4, 16, 16
    out_ch, stride = 8, 2
    x = jax.random.normal(k_x, (N, Cin, H, W), jnp.float32)        # NCHW
    params = init_basic_block_params(k_p, Cin, out_ch, stride)
    y = jax.block_until_ready(basic_block_forward(x, params, stride))
    y_ref = jax.block_until_ready(reference_forward(x, params, stride))
    assert y.shape == (N, out_ch, H // stride, W // stride), y.shape
    err = float(jnp.max(jnp.abs(y - y_ref)))
    assert jnp.allclose(y, y_ref, atol=3e-2, rtol=3e-2), err

    # Config B: identity shortcut (stride 1, matching channels).
    x2 = jax.random.normal(k_x2, (N, out_ch, H, W), jnp.float32)
    params2 = init_basic_block_params(k_p2, out_ch, out_ch, 1)
    y2 = jax.block_until_ready(basic_block_forward(x2, params2, 1))
    y2_ref = jax.block_until_ready(reference_forward(x2, params2, 1))
    assert y2.shape == (N, out_ch, H, W), y2.shape
    err2 = float(jnp.max(jnp.abs(y2 - y2_ref)))
    assert jnp.allclose(y2, y2_ref, atol=3e-2, rtol=3e-2), err2

    print("KERNEL_OK")
</pallas_src>

<mosaic_0001>
module attributes {stable_mosaic.version = 11 : i64} {
  func.func @_basic_block_kernel(%arg0: i32, %arg1: memref<4x9x9x4xf32, #tpu.memory_space<vmem>>, %arg2: memref<9x4x128xbf16, #tpu.memory_space<vmem>>, %arg3: memref<9x128x128xbf16, #tpu.memory_space<vmem>>, %arg4: memref<4x128xbf16, #tpu.memory_space<vmem>>, %arg5: memref<1x128xf32, #tpu.memory_space<vmem>>, %arg6: memref<1x128xf32, #tpu.memory_space<vmem>>, %arg7: memref<1x128xf32, #tpu.memory_space<vmem>>, %arg8: memref<1x128xf32, #tpu.memory_space<vmem>>, %arg9: memref<1x128xf32, #tpu.memory_space<vmem>>, %arg10: memref<1x128xf32, #tpu.memory_space<vmem>>, %arg11: memref<1x64x128xf32, #tpu.memory_space<vmem>>, %arg12: memref<10x10x128xf32, #tpu.memory_space<vmem>>) attributes {dimension_semantics = [#tpu.dimension_semantics<parallel>], iteration_bounds = array<i64: 2>, scalar_prefetch = 0 : i64, scratch_operands = 1 : i64, tpu.core_type = #tpu.core_type<tc>, window_params = [{transform_indices = @transform_0, window_bounds = array<i64: 4, 9, 9, 4>}, {pipeline_mode = #tpu.pipeline_mode<synchronous>, transform_indices = @transform_1, window_bounds = array<i64: 9, 4, 128>}, {pipeline_mode = #tpu.pipeline_mode<synchronous>, transform_indices = @transform_2, window_bounds = array<i64: 9, 128, 128>}, {pipeline_mode = #tpu.pipeline_mode<synchronous>, transform_indices = @transform_3, window_bounds = array<i64: 4, 128>}, {pipeline_mode = #tpu.pipeline_mode<synchronous>, transform_indices = @transform_4, window_bounds = array<i64: 1, 128>}, {pipeline_mode = #tpu.pipeline_mode<synchronous>, transform_indices = @transform_5, window_bounds = array<i64: 1, 128>}, {pipeline_mode = #tpu.pipeline_mode<synchronous>, transform_indices = @transform_6, window_bounds = array<i64: 1, 128>}, {pipeline_mode = #tpu.pipeline_mode<synchronous>, transform_indices = @transform_7, window_bounds = array<i64: 1, 128>}, {pipeline_mode = #tpu.pipeline_mode<synchronous>, transform_indices = @transform_8, window_bounds = array<i64: 1, 128>}, {pipeline_mode = #tpu.pipeline_mode<synchronous>, transform_indices = @transform_9, window_bounds = array<i64: 1, 128>}, {transform_indices = @transform_10, window_bounds = array<i64: 1, 64, 128>}]} {
    %cst = arith.constant 0.000000e+00 : f32
    %0 = vector.broadcast %cst : f32 to vector<64x128xf32>
    %c0 = arith.constant 0 : index
    %c0_0 = arith.constant 0 : index
    %c0_1 = arith.constant 0 : index
    %c0_2 = arith.constant 0 : index
    %1 = vector.load %arg1[%c0, %c0_0, %c0_1, %c0_2] : memref<4x9x9x4xf32, #tpu.memory_space<vmem>>, vector<1x8x8x4xf32>
    %2 = vector.shape_cast %1 : vector<1x8x8x4xf32> to vector<8x8x4xf32>
    %3 = vector.shape_cast %2 : vector<8x8x4xf32> to vector<64x4xf32>
    %4 = arith.truncf %3 : vector<64x4xf32> to vector<64x4xbf16>
    %c0_3 = arith.constant 0 : index
    %c0_4 = arith.constant 0 : index
    %c0_5 = arith.constant 0 : index
    %5 = vector.load %arg2[%c0_3, %c0_4, %c0_5] : memref<9x4x128xbf16, #tpu.memory_space<vmem>>, vector<1x4x128xbf16>
    %6 = vector.shape_cast %5 : vector<1x4x128xbf16> to vector<4x128xbf16>
    %cst_6 = arith.constant dense<0.000000e+00> : vector<64x128xf32>
    %7 = tpu.matmul %4, %6, %cst_6 {dimension_numbers = #tpu.dot_dimension_numbers<[1], [0], [0], [1], [0, 0, 1, 1], [], []>} : vector<64x4xbf16>, vector<4x128xbf16>, vector<64x128xf32> -> vector<64x128xf32>
    %8 = arith.addf %0, %7 : vector<64x128xf32>
    %c1 = arith.constant 1 : index
    %c0_7 = arith.constant 0 : index
    %c0_8 = arith.constant 0 : index
    %c0_9 = arith.constant 0 : index
    %9 = vector.load %arg1[%c1, %c0_7, %c0_8, %c0_9] : memref<4x9x9x4xf32, #tpu.memory_space<vmem>>, vector<1x8x8x4xf32>
    %10 = vector.shape_cast %9 : vector<1x8x8x4xf32> to vector<8x8x4xf32>
    %11 = vector.shape_cast %10 : vector<8x8x4xf32> to vector<64x4xf32>
    %12 = arith.truncf %11 : vector<64x4xf32> to vector<64x4xbf16>
    %c1_10 = arith.constant 1 : index
    %c0_11 = arith.constant 0 : index
    %c0_12 = arith.constant 0 : index
    %13 = vector.load %arg2[%c1_10, %c0_11, %c0_12] : memref<9x4x128xbf16, #tpu.memory_space<vmem>>, vector<1x4x128xbf16>
    %14 = vector.shape_cast %13 : vector<1x4x128xbf16> to vector<4x128xbf16>
    %cst_13 = arith.constant dense<0.000000e+00> : vector<64x128xf32>
    %15 = tpu.matmul %12, %14, %cst_13 {dimension_numbers = #tpu.dot_dimension_numbers<[1], [0], [0], [1], [0, 0, 1, 1], [], []>} : vector<64x4xbf16>, vector<4x128xbf16>, vector<64x128xf32> -> vector<64x128xf32>
    %16 = arith.addf %8, %15 : vector<64x128xf32>
    %c0_14 = arith.constant 0 : index
    %c0_15 = arith.constant 0 : index
    %c1_16 = arith.constant 1 : index
    %c0_17 = arith.constant 0 : index
    %17 = vector.load %arg1[%c0_14, %c0_15, %c1_16, %c0_17] : memref<4x9x9x4xf32, #tpu.memory_space<vmem>>, vector<1x8x8x4xf32>
    %18 = vector.shape_cast %17 : vector<1x8x8x4xf32> to vector<8x8x4xf32>
    %19 = vector.shape_cast %18 : vector<8x8x4xf32> to vector<64x4xf32>
    %20 = arith.truncf %19 : vector<64x4xf32> to vector<64x4xbf16>
    %c2 = arith.constant 2 : index
    %c0_18 = arith.constant 0 : index
    %c0_19 = arith.constant 0 : index
    %21 = vector.load %arg2[%c2, %c0_18, %c0_19] : memref<9x4x128xbf16, #tpu.memory_space<vmem>>, vector<1x4x128xbf16>
    %22 = vector.shape_cast %21 : vector<1x4x128xbf16> to vector<4x128xbf16>
    %cst_20 = arith.constant dense<0.000000e+00> : vector<64x128xf32>
    %23 = tpu.matmul %20, %22, %cst_20 {dimension_numbers = #tpu.dot_dimension_numbers<[1], [0], [0], [1], [0, 0, 1, 1], [], []>} : vector<64x4xbf16>, vector<4x128xbf16>, vector<64x128xf32> -> vector<64x128xf32>
    %24 = arith.addf %16, %23 : vector<64x128xf32>
    %c2_21 = arith.constant 2 : index
    %c0_22 = arith.constant 0 : index
    %c0_23 = arith.constant 0 : index
    %c0_24 = arith.constant 0 : index
    %25 = vector.load %arg1[%c2_21, %c0_22, %c0_23, %c0_24] : memref<4x9x9x4xf32, #tpu.memory_space<vmem>>, vector<1x8x8x4xf32>
    %26 = vector.shape_cast %25 : vector<1x8x8x4xf32> to vector<8x8x4xf32>
    %27 = vector.shape_cast %26 : vector<8x8x4xf32> to vector<64x4xf32>
    %28 = arith.truncf %27 : vector<64x4xf32> to vector<64x4xbf16>
    %c3 = arith.constant 3 : index
    %c0_25 = arith.constant 0 : index
    %c0_26 = arith.constant 0 : index
    %29 = vector.load %arg2[%c3, %c0_25, %c0_26] : memref<9x4x128xbf16, #tpu.memory_space<vmem>>, vector<1x4x128xbf16>
    %30 = vector.shape_cast %29 : vector<1x4x128xbf16> to vector<4x128xbf16>
    %cst_27 = arith.constant dense<0.000000e+00> : vector<64x128xf32>
    %31 = tpu.matmul %28, %30, %cst_27 {dimension_numbers = #tpu.dot_dimension_numbers<[1], [0], [0], [1], [0, 0, 1, 1], [], []>} : vector<64x4xbf16>, vector<4x128xbf16>, vector<64x128xf32> -> vector<64x128xf32>
    %32 = arith.addf %24, %31 : vector<64x128xf32>
    %c3_28 = arith.constant 3 : index
    %c0_29 = arith.constant 0 : index
    %c0_30 = arith.constant 0 : index
    %c0_31 = arith.constant 0 : index
    %33 = vector.load %arg1[%c3_28, %c0_29, %c0_30, %c0_31] : memref<4x9x9x4xf32, #tpu.memory_space<vmem>>, vector<1x8x8x4xf32>
    %34 = vector.shape_cast %33 : vector<1x8x8x4xf32> to vector<8x8x4xf32>
    %35 = vector.shape_cast %34 : vector<8x8x4xf32> to vector<64x4xf32>
    %36 = arith.truncf %35 : vector<64x4xf32> to vector<64x4xbf16>
    %c4 = arith.constant 4 : index
    %c0_32 = arith.constant 0 : index
    %c0_33 = arith.constant 0 : index
    %37 = vector.load %arg2[%c4, %c0_32, %c0_33] : memref<9x4x128xbf16, #tpu.memory_space<vmem>>, vector<1x4x128xbf16>
    %38 = vector.shape_cast %37 : vector<1x4x128xbf16> to vector<4x128xbf16>
    %cst_34 = arith.constant dense<0.000000e+00> : vector<64x128xf32>
    %39 = tpu.matmul %36, %38, %cst_34 {dimension_numbers = #tpu.dot_dimension_numbers<[1], [0], [0], [1], [0, 0, 1, 1], [], []>} : vector<64x4xbf16>, vector<4x128xbf16>, vector<64x128xf32> -> vector<64x128xf32>
    %40 = arith.addf %32, %39 : vector<64x128xf32>
    %c2_35 = arith.constant 2 : index
    %c0_36 = arith.constant 0 : index
    %c1_37 = arith.constant 1 : index
    %c0_38 = arith.constant 0 : index
    %41 = vector.load %arg1[%c2_35, %c0_36, %c1_37, %c0_38] : memref<4x9x9x4xf32, #tpu.memory_space<vmem>>, vector<1x8x8x4xf32>
    %42 = vector.shape_cast %41 : vector<1x8x8x4xf32> to vector<8x8x4xf32>
    %43 = vector.shape_cast %42 : vector<8x8x4xf32> to vector<64x4xf32>
    %44 = arith.truncf %43 : vector<64x4xf32> to vector<64x4xbf16>
    %c5 = arith.constant 5 : index
    %c0_39 = arith.constant 0 : index
    %c0_40 = arith.constant 0 : index
    %45 = vector.load %arg2[%c5, %c0_39, %c0_40] : memref<9x4x128xbf16, #tpu.memory_space<vmem>>, vector<1x4x128xbf16>
    %46 = vector.shape_cast %45 : vector<1x4x128xbf16> to vector<4x128xbf16>
    %cst_41 = arith.constant dense<0.000000e+00> : vector<64x128xf32>
    %47 = tpu.matmul %44, %46, %cst_41 {dimension_numbers = #tpu.dot_dimension_numbers<[1], [0], [0], [1], [0, 0, 1, 1], [], []>} : vector<64x4xbf16>, vector<4x128xbf16>, vector<64x128xf32> -> vector<64x128xf32>
    %48 = arith.addf %40, %47 : vector<64x128xf32>
    %c0_42 = arith.constant 0 : index
    %c1_43 = arith.constant 1 : index
    %c0_44 = arith.constant 0 : index
    %c0_45 = arith.constant 0 : index
    %49 = vector.load %arg1[%c0_42, %c1_43, %c0_44, %c0_45] : memref<4x9x9x4xf32, #tpu.memory_space<vmem>>, vector<1x8x8x4xf32>
    %50 = vector.shape_cast %49 : vector<1x8x8x4xf32> to vector<8x8x4xf32>
    %51 = vector.shape_cast %50 : vector<8x8x4xf32> to vector<64x4xf32>
    %52 = arith.truncf %51 : vector<64x4xf32> to vector<64x4xbf16>
    %c6 = arith.constant 6 : index
    %c0_46 = arith.constant 0 : index
    %c0_47 = arith.constant 0 : index
    %53 = vector.load %arg2[%c6, %c0_46, %c0_47] : memref<9x4x128xbf16, #tpu.memory_space<vmem>>, vector<1x4x128xbf16>
    %54 = vector.shape_cast %53 : vector<1x4x128xbf16> to vector<4x128xbf16>
    %cst_48 = arith.constant dense<0.000000e+00> : vector<64x128xf32>
    %55 = tpu.matmul %52, %54, %cst_48 {dimension_numbers = #tpu.dot_dimension_numbers<[1], [0], [0], [1], [0, 0, 1, 1], [], []>} : vector<64x4xbf16>, vector<4x128xbf16>, vector<64x128xf32> -> vector<64x128xf32>
    %56 = arith.addf %48, %55 : vector<64x128xf32>
    %c1_49 = arith.constant 1 : index
    %c1_50 = arith.constant 1 : index
    %c0_51 = arith.constant 0 : index
    %c0_52 = arith.constant 0 : index
    %57 = vector.load %arg1[%c1_49, %c1_50, %c0_51, %c0_52] : memref<4x9x9x4xf32, #tpu.memory_space<vmem>>, vector<1x8x8x4xf32>
    %58 = vector.shape_cast %57 : vector<1x8x8x4xf32> to vector<8x8x4xf32>
    %59 = vector.shape_cast %58 : vector<8x8x4xf32> to vector<64x4xf32>
    %60 = arith.truncf %59 : vector<64x4xf32> to vector<64x4xbf16>
    %c7 = arith.constant 7 : index
    %c0_53 = arith.constant 0 : index
    %c0_54 = arith.constant 0 : index
    %61 = vector.load %arg2[%c7, %c0_53, %c0_54] : memref<9x4x128xbf16, #tpu.memory_space<vmem>>, vector<1x4x128xbf16>
    %62 = vector.shape_cast %61 : vector<1x4x128xbf16> to vector<4x128xbf16>
    %cst_55 = arith.constant dense<0.000000e+00> : vector<64x128xf32>
    %63 = tpu.matmul %60, %62, %cst_55 {dimension_numbers = #tpu.dot_dimension_numbers<[1], [0], [0], [1], [0, 0, 1, 1], [], []>} : vector<64x4xbf16>, vector<4x128xbf16>, vector<64x128xf32> -> vector<64x128xf32>
    %64 = arith.addf %56, %63 : vector<64x128xf32>
    %c0_56 = arith.constant 0 : index
    %c1_57 = arith.constant 1 : index
    %c1_58 = arith.constant 1 : index
    %c0_59 = arith.constant 0 : index
    %65 = vector.load %arg1[%c0_56, %c1_57, %c1_58, %c0_59] : memref<4x9x9x4xf32, #tpu.memory_space<vmem>>, vector<1x8x8x4xf32>
    %66 = vector.shape_cast %65 : vector<1x8x8x4xf32> to vector<8x8x4xf32>
    %67 = vector.shape_cast %66 : vector<8x8x4xf32> to vector<64x4xf32>
    %68 = arith.truncf %67 : vector<64x4xf32> to vector<64x4xbf16>
    %c8 = arith.constant 8 : index
    %c0_60 = arith.constant 0 : index
    %c0_61 = arith.constant 0 : index
    %69 = vector.load %arg2[%c8, %c0_60, %c0_61] : memref<9x4x128xbf16, #tpu.memory_space<vmem>>, vector<1x4x128xbf16>
    %70 = vector.shape_cast %69 : vector<1x4x128xbf16> to vector<4x128xbf16>
    %cst_62 = arith.constant dense<0.000000e+00> : vector<64x128xf32>
    %71 = tpu.matmul %68, %70, %cst_62 {dimension_numbers = #tpu.dot_dimension_numbers<[1], [0], [0], [1], [0, 0, 1, 1], [], []>} : vector<64x4xbf16>, vector<4x128xbf16>, vector<64x128xf32> -> vector<64x128xf32>
    %72 = arith.addf %64, %71 : vector<64x128xf32>
    %c0_63 = arith.constant 0 : index
    %c0_64 = arith.constant 0 : index
    %73 = vector.load %arg5[%c0_63, %c0_64] : memref<1x128xf32, #tpu.memory_space<vmem>>, vector<1x128xf32>
    %74 = vector.broadcast %73 : vector<1x128xf32> to vector<64x128xf32>
    %75 = arith.mulf %72, %74 : vector<64x128xf32>
    %c0_65 = arith.constant 0 : index
    %c0_66 = arith.constant 0 : index
    %76 = vector.load %arg6[%c0_65, %c0_66] : memref<1x128xf32, #tpu.memory_space<vmem>>, vector<1x128xf32>
    %77 = vector.broadcast %76 : vector<1x128xf32> to vector<64x128xf32>
    %78 = arith.addf %75, %77 : vector<64x128xf32>
    %cst_67 = arith.constant 0.000000e+00 : f32
    %79 = vector.broadcast %cst_67 : f32 to vector<64x128xf32>
    %80 = arith.maximumf %78, %79 : vector<64x128xf32>
    %cst_68 = arith.constant 0.000000e+00 : f32
    %81 = vector.broadcast %cst_68 : f32 to vector<10x10x128xf32>
    %c0_69 = arith.constant 0 : index
    %c0_70 = arith.constant 0 : index
    %c0_71 = arith.constant 0 : index
    %82 = vector.load %arg12[%c0_69, %c0_70, %c0_71] : memref<10x10x128xf32, #tpu.memory_space<vmem>>, vector<10x10x128xf32>
    tpu.vector_store %arg12[%c0_69, %c0_70, %c0_71], %81 {strides = array<i32>} : memref<10x10x128xf32, #tpu.memory_space<vmem>>, vector<10x10x128xf32>,
    %83 = vector.shape_cast %80 : vector<64x128xf32> to vector<8x8x128xf32>
    %c1_72 = arith.constant 1 : index
    %c1_73 = arith.constant 1 : index
    %c0_74 = arith.constant 0 : index
    %84 = vector.load %arg12[%c1_72, %c1_73, %c0_74] : memref<10x10x128xf32, #tpu.memory_space<vmem>>, vector<8x8x128xf32>
    tpu.vector_store %arg12[%c1_72, %c1_73, %c0_74], %83 {strides = array<i32>} : memref<10x10x128xf32, #tpu.memory_space<vmem>>, vector<8x8x128xf32>,
    %cst_75 = arith.constant 0.000000e+00 : f32
    %85 = vector.broadcast %cst_75 : f32 to vector<64x128xf32>
    %c0_76 = arith.constant 0 : index
    %c0_77 = arith.constant 0 : index
    %c0_78 = arith.constant 0 : index
    %86 = vector.load %arg12[%c0_76, %c0_77, %c0_78] : memref<10x10x128xf32, #tpu.memory_space<vmem>>, vector<8x8x128xf32>
    %87 = vector.shape_cast %86 : vector<8x8x128xf32> to vector<64x128xf32>
    %88 = arith.truncf %87 : vector<64x128xf32> to vector<64x128xbf16>
    %c0_79 = arith.constant 0 : index
    %c0_80 = arith.constant 0 : index
    %c0_81 = arith.constant 0 : index
    %89 = vector.load %arg3[%c0_79, %c0_80, %c0_81] : memref<9x128x128xbf16, #tpu.memory_space<vmem>>, vector<1x128x128xbf16>
    %90 = vector.shape_cast %89 : vector<1x128x128xbf16> to vector<128x128xbf16>
    %cst_82 = arith.constant dense<0.000000e+00> : vector<64x128xf32>
    %91 = tpu.matmul %88, %90, %cst_82 {dimension_numbers = #tpu.dot_dimension_numbers<[1], [0], [0], [1], [0, 0, 1, 1], [], []>} : vector<64x128xbf16>, vector<128x128xbf16>, vector<64x128xf32> -> vector<64x128xf32>
    %92 = arith.addf %85, %91 : vector<64x128xf32>
    %c0_83 = arith.constant 0 : index
    %c1_84 = arith.constant 1 : index
    %c0_85 = arith.constant 0 : index
    %93 = vector.load %arg12[%c0_83, %c1_84, %c0_85] : memref<10x10x128xf32, #tpu.memory_space<vmem>>, vector<8x8x128xf32>
    %94 = vector.shape_cast %93 : vector<8x8x128xf32> to vector<64x128xf32>
    %95 = arith.truncf %94 : vector<64x128xf32> to vector<64x128xbf16>
    %c1_86 = arith.constant 1 : index
    %c0_87 = arith.constant 0 : index
    %c0_88 = arith.constant 0 : index
    %96 = vector.load %arg3[%c1_86, %c0_87, %c0_88] : memref<9x128x128xbf16, #tpu.memory_space<vmem>>, vector<1x128x128xbf16>
    %97 = vector.shape_cast %96 : vector<1x128x128xbf16> to vector<128x128xbf16>
    %cst_89 = arith.constant dense<0.000000e+00> : vector<64x128xf32>
    %98 = tpu.matmul %95, %97, %cst_89 {dimension_numbers = #tpu.dot_dimension_numbers<[1], [0], [0], [1], [0, 0, 1, 1], [], []>} : vector<64x128xbf16>, vector<128x128xbf16>, vector<64x128xf32> -> vector<64x128xf32>
    %99 = arith.addf %92, %98 : vector<64x128xf32>
    %c0_90 = arith.constant 0 : index
    %c2_91 = arith.constant 2 : index
    %c0_92 = arith.constant 0 : index
    %100 = vector.load %arg12[%c0_90, %c2_91, %c0_92] : memref<10x10x128xf32, #tpu.memory_space<vmem>>, vector<8x8x128xf32>
    %101 = vector.shape_cast %100 : vector<8x8x128xf32> to vector<64x128xf32>
    %102 = arith.truncf %101 : vector<64x128xf32> to vector<64x128xbf16>
    %c2_93 = arith.constant 2 : index
    %c0_94 = arith.constant 0 : index
    %c0_95 = arith.constant 0 : index
    %103 = vector.load %arg3[%c2_93, %c0_94, %c0_95] : memref<9x128x128xbf16, #tpu.memory_space<vmem>>, vector<1x128x128xbf16>
    %104 = vector.shape_cast %103 : vector<1x128x128xbf16> to vector<128x128xbf16>
    %cst_96 = arith.constant dense<0.000000e+00> : vector<64x128xf32>
    %105 = tpu.matmul %102, %104, %cst_96 {dimension_numbers = #tpu.dot_dimension_numbers<[1], [0], [0], [1], [0, 0, 1, 1], [], []>} : vector<64x128xbf16>, vector<128x128xbf16>, vector<64x128xf32> -> vector<64x128xf32>
    %106 = arith.addf %99, %105 : vector<64x128xf32>
    %c1_97 = arith.constant 1 : index
    %c0_98 = arith.constant 0 : index
    %c0_99 = arith.constant 0 : index
    %107 = vector.load %arg12[%c1_97, %c0_98, %c0_99] : memref<10x10x128xf32, #tpu.memory_space<vmem>>, vector<8x8x128xf32>
    %108 = vector.shape_cast %107 : vector<8x8x128xf32> to vector<64x128xf32>
    %109 = arith.truncf %108 : vector<64x128xf32> to vector<64x128xbf16>
    %c3_100 = arith.constant 3 : index
    %c0_101 = arith.constant 0 : index
    %c0_102 = arith.constant 0 : index
    %110 = vector.load %arg3[%c3_100, %c0_101, %c0_102] : memref<9x128x128xbf16, #tpu.memory_space<vmem>>, vector<1x128x128xbf16>
    %111 = vector.shape_cast %110 : vector<1x128x128xbf16> to vector<128x128xbf16>
    %cst_103 = arith.constant dense<0.000000e+00> : vector<64x128xf32>
    %112 = tpu.matmul %109, %111, %cst_103 {dimension_numbers = #tpu.dot_dimension_numbers<[1], [0], [0], [1], [0, 0, 1, 1], [], []>} : vector<64x128xbf16>, vector<128x128xbf16>, vector<64x128xf32> -> vector<64x128xf32>
    %113 = arith.addf %106, %112 : vector<64x128xf32>
    %c1_104 = arith.constant 1 : index
    %c1_105 = arith.constant 1 : index
    %c0_106 = arith.constant 0 : index
    %114 = vector.load %arg12[%c1_104, %c1_105, %c0_106] : memref<10x10x128xf32, #tpu.memory_space<vmem>>, vector<8x8x128xf32>
    %115 = vector.shape_cast %114 : vector<8x8x128xf32> to vector<64x128xf32>
    %116 = arith.truncf %115 : vector<64x128xf32> to vector<64x128xbf16>
    %c4_107 = arith.constant 4 : index
    %c0_108 = arith.constant 0 : index
    %c0_109 = arith.constant 0 : index
    %117 = vector.load %arg3[%c4_107, %c0_108, %c0_109] : memref<9x128x128xbf16, #tpu.memory_space<vmem>>, vector<1x128x128xbf16>
    %118 = vector.shape_cast %117 : vector<1x128x128xbf16> to vector<128x128xbf16>
    %cst_110 = arith.constant dense<0.000000e+00> : vector<64x128xf32>
    %119 = tpu.matmul %116, %118, %cst_110 {dimension_numbers = #tpu.dot_dimension_numbers<[1], [0], [0], [1], [0, 0, 1, 1], [], []>} : vector<64x128xbf16>, vector<128x128xbf16>, vector<64x128xf32> -> vector<64x128xf32>
    %120 = arith.addf %113, %119 : vector<64x128xf32>
    %c1_111 = arith.constant 1 : index
    %c2_112 = arith.constant 2 : index
    %c0_113 = arith.constant 0 : index
    %121 = vector.load %arg12[%c1_111, %c2_112, %c0_113] : memref<10x10x128xf32, #tpu.memory_space<vmem>>, vector<8x8x128xf32>
    %122 = vector.shape_cast %121 : vector<8x8x128xf32> to vector<64x128xf32>
    %123 = arith.truncf %122 : vector<64x128xf32> to vector<64x128xbf16>
    %c5_114 = arith.constant 5 : index
    %c0_115 = arith.constant 0 : index
    %c0_116 = arith.constant 0 : index
    %124 = vector.load %arg3[%c5_114, %c0_115, %c0_116] : memref<9x128x128xbf16, #tpu.memory_space<vmem>>, vector<1x128x128xbf16>
    %125 = vector.shape_cast %124 : vector<1x128x128xbf16> to vector<128x128xbf16>
    %cst_117 = arith.constant dense<0.000000e+00> : vector<64x128xf32>
    %126 = tpu.matmul %123, %125, %cst_117 {dimension_numbers = #tpu.dot_dimension_numbers<[1], [0], [0], [1], [0, 0, 1, 1], [], []>} : vector<64x128xbf16>, vector<128x128xbf16>, vector<64x128xf32> -> vector<64x128xf32>
    %127 = arith.addf %120, %126 : vector<64x128xf32>
    %c2_118 = arith.constant 2 : index
    %c0_119 = arith.constant 0 : index
    %c0_120 = arith.constant 0 : index
    %128 = vector.load %arg12[%c2_118, %c0_119, %c0_120] : memref<10x10x128xf32, #tpu.memory_space<vmem>>, vector<8x8x128xf32>
    %129 = vector.shape_cast %128 : vector<8x8x128xf32> to vector<64x128xf32>
    %130 = arith.truncf %129 : vector<64x128xf32> to vector<64x128xbf16>
    %c6_121 = arith.constant 6 : index
    %c0_122 = arith.constant 0 : index
    %c0_123 = arith.constant 0 : index
    %131 = vector.load %arg3[%c6_121, %c0_122, %c0_123] : memref<9x128x128xbf16, #tpu.memory_space<vmem>>, vector<1x128x128xbf16>
    %132 = vector.shape_cast %131 : vector<1x128x128xbf16> to vector<128x128xbf16>
    %cst_124 = arith.constant dense<0.000000e+00> : vector<64x128xf32>
    %133 = tpu.matmul %130, %132, %cst_124 {dimension_numbers = #tpu.dot_dimension_numbers<[1], [0], [0], [1], [0, 0, 1, 1], [], []>} : vector<64x128xbf16>, vector<128x128xbf16>, vector<64x128xf32> -> vector<64x128xf32>
    %134 = arith.addf %127, %133 : vector<64x128xf32>
    %c2_125 = arith.constant 2 : index
    %c1_126 = arith.constant 1 : index
    %c0_127 = arith.constant 0 : index
    %135 = vector.load %arg12[%c2_125, %c1_126, %c0_127] : memref<10x10x128xf32, #tpu.memory_space<vmem>>, vector<8x8x128xf32>
    %136 = vector.shape_cast %135 : vector<8x8x128xf32> to vector<64x128xf32>
    %137 = arith.truncf %136 : vector<64x128xf32> to vector<64x128xbf16>
    %c7_128 = arith.constant 7 : index
    %c0_129 = arith.constant 0 : index
    %c0_130 = arith.constant 0 : index
    %138 = vector.load %arg3[%c7_128, %c0_129, %c0_130] : memref<9x128x128xbf16, #tpu.memory_space<vmem>>, vector<1x128x128xbf16>
    %139 = vector.shape_cast %138 : vector<1x128x128xbf16> to vector<128x128xbf16>
    %cst_131 = arith.constant dense<0.000000e+00> : vector<64x128xf32>
    %140 = tpu.matmul %137, %139, %cst_131 {dimension_numbers = #tpu.dot_dimension_numbers<[1], [0], [0], [1], [0, 0, 1, 1], [], []>} : vector<64x128xbf16>, vector<128x128xbf16>, vector<64x128xf32> -> vector<64x128xf32>
    %141 = arith.addf %134, %140 : vector<64x128xf32>
    %c2_132 = arith.constant 2 : index
    %c2_133 = arith.constant 2 : index
    %c0_134 = arith.constant 0 : index
    %142 = vector.load %arg12[%c2_132, %c2_133, %c0_134] : memref<10x10x128xf32, #tpu.memory_space<vmem>>, vector<8x8x128xf32>
    %143 = vector.shape_cast %142 : vector<8x8x128xf32> to vector<64x128xf32>
    %144 = arith.truncf %143 : vector<64x128xf32> to vector<64x128xbf16>
    %c8_135 = arith.constant 8 : index
    %c0_136 = arith.constant 0 : index
    %c0_137 = arith.constant 0 : index
    %145 = vector.load %arg3[%c8_135, %c0_136, %c0_137] : memref<9x128x128xbf16, #tpu.memory_space<vmem>>, vector<1x128x128xbf16>
    %146 = vector.shape_cast %145 : vector<1x128x128xbf16> to vector<128x128xbf16>
    %cst_138 = arith.constant dense<0.000000e+00> : vector<64x128xf32>
    %147 = tpu.matmul %144, %146, %cst_138 {dimension_numbers = #tpu.dot_dimension_numbers<[1], [0], [0], [1], [0, 0, 1, 1], [], []>} : vector<64x128xbf16>, vector<128x128xbf16>, vector<64x128xf32> -> vector<64x128xf32>
    %148 = arith.addf %141, %147 : vector<64x128xf32>
    %c3_139 = arith.constant 3 : index
    %c0_140 = arith.constant 0 : index
    %c0_141 = arith.constant 0 : index
    %c0_142 = arith.constant 0 : index
    %149 = vector.load %arg1[%c3_139, %c0_140, %c0_141, %c0_142] : memref<4x9x9x4xf32, #tpu.memory_space<vmem>>, vector<1x8x8x4xf32>
    %150 = vector.shape_cast %149 : vector<1x8x8x4xf32> to vector<8x8x4xf32>
    %151 = vector.shape_cast %150 : vector<8x8x4xf32> to vector<64x4xf32>
    %152 = arith.truncf %151 : vector<64x4xf32> to vector<64x4xbf16>
    %c0_143 = arith.constant 0 : index
    %c0_144 = arith.constant 0 : index
    %153 = vector.load %arg4[%c0_143, %c0_144] : memref<4x128xbf16, #tpu.memory_space<vmem>>, vector<4x128xbf16>
    %cst_145 = arith.constant dense<0.000000e+00> : vector<64x128xf32>
    %154 = tpu.matmul %152, %153, %cst_145 {dimension_numbers = #tpu.dot_dimension_numbers<[1], [0], [0], [1], [0, 0, 1, 1], [], []>} : vector<64x4xbf16>, vector<4x128xbf16>, vector<64x128xf32> -> vector<64x128xf32>
    %c0_146 = arith.constant 0 : index
    %c0_147 = arith.constant 0 : index
    %155 = vector.load %arg9[%c0_146, %c0_147] : memref<1x128xf32, #tpu.memory_space<vmem>>, vector<1x128xf32>
    %156 = vector.broadcast %155 : vector<1x128xf32> to vector<64x128xf32>
    %157 = arith.mulf %154, %156 : vector<64x128xf32>
    %c0_148 = arith.constant 0 : index
    %c0_149 = arith.constant 0 : index
    %158 = vector.load %arg10[%c0_148, %c0_149] : memref<1x128xf32, #tpu.memory_space<vmem>>, vector<1x128xf32>
    %159 = vector.broadcast %158 : vector<1x128xf32> to vector<64x128xf32>
    %160 = arith.addf %157, %159 : vector<64x128xf32>
    %c0_150 = arith.constant 0 : index
    %c0_151 = arith.constant 0 : index
    %161 = vector.load %arg7[%c0_150, %c0_151] : memref<1x128xf32, #tpu.memory_space<vmem>>, vector<1x128xf32>
    %162 = vector.broadcast %161 : vector<1x128xf32> to vector<64x128xf32>
    %163 = arith.mulf %148, %162 : vector<64x128xf32>
    %c0_152 = arith.constant 0 : index
    %c0_153 = arith.constant 0 : index
    %164 = vector.load %arg8[%c0_152, %c0_153] : memref<1x128xf32, #tpu.memory_space<vmem>>, vector<1x128xf32>
    %165 = vector.broadcast %164 : vector<1x128xf32> to vector<64x128xf32>
    %166 = arith.addf %163, %165 : vector<64x128xf32>
    %167 = arith.addf %166, %160 : vector<64x128xf32>
    %cst_154 = arith.constant 0.000000e+00 : f32
    %168 = vector.broadcast %cst_154 : f32 to vector<64x128xf32>
    %169 = arith.maximumf %167, %168 : vector<64x128xf32>
    %c0_155 = arith.constant 0 : index
    %c0_156 = arith.constant 0 : index
    %c0_157 = arith.constant 0 : index
    %170 = vector.load %arg11[%c0_155, %c0_156, %c0_157] : memref<1x64x128xf32, #tpu.memory_space<vmem>>, vector<1x64x128xf32>
    %171 = vector.shape_cast %170 : vector<1x64x128xf32> to vector<64x128xf32>
    %172 = vector.shape_cast %169 : vector<64x128xf32> to vector<1x64x128xf32>
    tpu.vector_store %arg11[%c0_155, %c0_156, %c0_157], %172 {strides = array<i32>} : memref<1x64x128xf32, #tpu.memory_space<vmem>>, vector<1x64x128xf32>,
    return
  }
  func.func @transform_0(%arg0: i32) -> (i32, i32, i32, i32) {
    %c0_i32 = arith.constant 0 : i32
    %c0_i32_0 = arith.constant 0 : i32
    %c0_i32_1 = arith.constant 0 : i32
    %c0_i32_2 = arith.constant 0 : i32
    return %arg0, %c0_i32, %c0_i32_0, %c0_i32_1 : i32, i32, i32, i32
  }
  func.func @transform_1(%arg0: i32) -> (i32, i32, i32) {
    %c0_i32 = arith.constant 0 : i32
    %c0_i32_0 = arith.constant 0 : i32
    %c0_i32_1 = arith.constant 0 : i32
    %c0_i32_2 = arith.constant 0 : i32
    return %c0_i32, %c0_i32_0, %c0_i32_1 : i32, i32, i32
  }
  func.func @transform_2(%arg0: i32) -> (i32, i32, i32) {
    %c0_i32 = arith.constant 0 : i32
    %c0_i32_0 = arith.constant 0 : i32
    %c0_i32_1 = arith.constant 0 : i32
    %c0_i32_2 = arith.constant 0 : i32
    return %c0_i32, %c0_i32_0, %c0_i32_1 : i32, i32, i32
  }
  func.func @transform_3(%arg0: i32) -> (i32, i32) {
    %c0_i32 = arith.constant 0 : i32
    %c0_i32_0 = arith.constant 0 : i32
    %c0_i32_1 = arith.constant 0 : i32
    return %c0_i32, %c0_i32_0 : i32, i32
  }
  func.func @transform_4(%arg0: i32) -> (i32, i32) {
    %c0_i32 = arith.constant 0 : i32
    %c0_i32_0 = arith.constant 0 : i32
    %c0_i32_1 = arith.constant 0 : i32
    return %c0_i32, %c0_i32_0 : i32, i32
  }
  func.func @transform_5(%arg0: i32) -> (i32, i32) {
    %c0_i32 = arith.constant 0 : i32
    %c0_i32_0 = arith.constant 0 : i32
    %c0_i32_1 = arith.constant 0 : i32
    return %c0_i32, %c0_i32_0 : i32, i32
  }
  func.func @transform_6(%arg0: i32) -> (i32, i32) {
    %c0_i32 = arith.constant 0 : i32
    %c0_i32_0 = arith.constant 0 : i32
    %c0_i32_1 = arith.constant 0 : i32
    return %c0_i32, %c0_i32_0 : i32, i32
  }
  func.func @transform_7(%arg0: i32) -> (i32, i32) {
    %c0_i32 = arith.constant 0 : i32
    %c0_i32_0 = arith.constant 0 : i32
    %c0_i32_1 = arith.constant 0 : i32
    return %c0_i32, %c0_i32_0 : i32, i32
  }
  func.func @transform_8(%arg0: i32) -> (i32, i32) {
    %c0_i32 = arith.constant 0 : i32
    %c0_i32_0 = arith.constant 0 : i32
    %c0_i32_1 = arith.constant 0 : i32
    return %c0_i32, %c0_i32_0 : i32, i32
  }
  func.func @transform_9(%arg0: i32) -> (i32, i32) {
    %c0_i32 = arith.constant 0 : i32
    %c0_i32_0 = arith.constant 0 : i32
    %c0_i32_1 = arith.constant 0 : i32
    return %c0_i32, %c0_i32_0 : i32, i32
  }
  func.func @transform_10(%arg0: i32) -> (i32, i32, i32) {
    %c0_i32 = arith.constant 0 : i32
    %c0_i32_0 = arith.constant 0 : i32
    %c0_i32_1 = arith.constant 0 : i32
    return %arg0, %c0_i32, %c0_i32_0 : i32, i32, i32
  }
}

</mosaic_0001>

<bundles_post_ra>
// kernel: basic_block_forward.1
= control target key start
LH: loop header
LB: loop body
LE: loop exit
PB: predicated region body
PF: predicated region fallthrough
CT: control target
= control target key end

     0   :  { %s2900_s13 = smov 0   ;;  %s3753_s0 = inlined_call_operand.vmem [shape: f32[8,9,9,4], index: 0, kind: input, shape index: {}]   ;;  %s3754_s1 = inlined_call_operand.vmem [shape: bf16[9,4,128], index: 1, kind: input, shape index: {}]   ;;  %s3755_s2 = inlined_call_operand.vmem [shape: bf16[9,128,128], index: 2, kind: input, shape index: {}]   ;;  %s3756_s3 = inlined_call_operand.vmem [shape: bf16[4,128], index: 3, kind: input, shape index: {}]   ;;  %s3757_s4 = inlined_call_operand.vmem [shape: f32[1,128], index: 4, kind: input, shape index: {}]   ;;  %s3758_s5 = inlined_call_operand.vmem [shape: f32[1,128], index: 5, kind: input, shape index: {}]   ;;  %s3759_s6 = inlined_call_operand.vmem [shape: f32[1,128], index: 6, kind: input, shape index: {}]   ;;  %s3760_s7 = inlined_call_operand.vmem [shape: f32[1,128], index: 7, kind: input, shape index: {}]   ;;  %s3761_s8 = inlined_call_operand.vmem [shape: f32[1,128], index: 8, kind: input, shape index: {}]   ;;  %s3762_s9 = inlined_call_operand.vmem [shape: f32[1,128], index: 9, kind: input, shape index: {}]   ;;  %s3763_s10 = inlined_call_operand.vmem [shape: f32[2,64,128], index: 10, kind: output, shape index: {}]  }
   0x1 LB: > { %s2906_s14 = sadd.s32 4294967295, %s2842_s13   ;;  %p2209_p0 = scmp.ge.s32.totalorder %s2842_s13, 1  ;;  %s2842_s13 = sphi %s2900_s13, %s20_s13  }
   0x2   : > { %p314_p1 = scmp.lt.s32.totalorder %s2842_s13, 3 }
   0x4   : > { %p315_p2 = pnand %p2209_p0, %p314_p1 }
   0x5   : > { %s2210_s19 = sshll.u32 (!%p315_p2), %s2906_s14, 2  ;;  %p360_p4 = scmp.lt.s32.totalorder (!%p315_p2), %s2906_s14, 1 }
   0x6   : > { %318 = sbr.rel (%p315_p2) target bundleno = 633 (0x279), region = 60  ;;  %p354_p3 = scmp.lt.s32.totalorder (!%p315_p2), %s2210_s19, 7 }
   0xb   : > { %v2222_v0 = vld [vmem:[%s3754_s1 + $0x2] sm:$0x3]  ;;  %vm407_vm0 = vcmask 1041408   ;;  %v2231_v1 = vld [vmem:[%s3754_s1 + $0x4] sm:$0x3]  ;;  %s3765_s19 = smov (!%p354_p3, %s2210_s19), 7 }
   0xc   : > { %v409_v2 = vsel %vm407_vm0, %v2222_v0, 0  ;;  %v511_v3 = vsel %vm407_vm0, %v2231_v1, 0  ;;  %v378_v4 = vld [vmem:[%s3754_s1] sm:$0x3]  ;;  %v2244_v6 = vld [vmem:[%s3754_s1 + $0x6] sm:$0x3] }
   0xd   : > { %418 = vmatpush.bf16.msra.mxu0 %v409_v2  ;;  %520 = vmatpush.bf16.msra.mxu2 %v511_v3  ;;  %v453_v5 = vsel %vm407_vm0, %v378_v4, 0  ;;  %v578_v7 = vsel %vm407_vm0, %v2244_v6, 0  ;;  %s2820_s24 = smul.u32 144, %s3765_s19  ;;  %vm394_vm1 = vcmask 31744   ;;  %v2296_v20 = vld [vmem:[%s3754_s1 + $0xe] sm:$0x3] }
   0xe   : > { %2818 = vmatpush.bf16.msra.mxu3 %v511_v3  ;;  %2817 = vmatpush.bf16.msra.mxu1 %v453_v5  ;;  %v845_v21 = vsel %vm407_vm0, %v2296_v20, 0  ;;  %v2257_v46 = vld [vmem:[%s3754_s1 + $0x8] sm:$0x3]  ;;  %v2283_v47 = vld [vmem:[%s3754_s1 + $0xc] sm:$0x3]  ;;  %s3767_s14 = smov (!%p360_p4, %s2906_s14), 1 }
   0xf   : > { %s2930_s27 = scalar_lea.vmem %s3753_s0, %s2820_s24  ;;  %v2270_v48 = vld [vmem:[%s3754_s1 + $0xa] sm:$0x3]  ;;  %v645_v49 = vsel %vm407_vm0, %v2257_v46, 0  ;;  %v778_v50 = vsel %vm407_vm0, %v2283_v47, 0  ;;  %v2309_v63 = vld [vmem:[%s3754_s1 + $0x10] sm:$0x3] }
  0x10   : > { %v2214_v8 = vld [vmem:[%s2930_s27 + $0x90] sm:$0xff]  ;;  %v2934_v9 = vld [vmem:[%s2930_s27 + $0xa0] sm:$0xff]  ;;  %v711_v51 = vsel %vm407_vm0, %v2270_v48, 0  ;;  %v911_v1 = vsel %vm407_vm0, %v2309_v63, 0  ;;  %s2744_s24 = sshll.u32 %s3767_s14, 6 }
  0x11   : > { %462 = vmatpush.bf16.msrb.mxu0 %v453_v5  ;;  %v484_v10 = vld [vmem:[%s2930_s27 + $0x1] sm:$0xff]  ;;  %v388_v11 = vpack.c.bf16 %v2934_v9, %v2214_v8  ;;  %v2939_v12 = vld [vmem:[%s2930_s27 + $0x11] sm:$0xff]  ;;  %787 = vmatpush.bf16.msrb.mxu2 %v778_v50  ;;  %s3692_s28 = scalar_lea.vmem %s3763_s10, %s2744_s24 }
  0x12   : > { %587 = vmatpush.bf16.msrb.mxu3 %v578_v7  ;;  %v2942_v13 = vld [vmem:[%s2930_s27 + $0x61] sm:$0xff]  ;;  %v2945_v14 = vld [vmem:[%s2930_s27 + $0x71] sm:$0xff]  ;;  %v492_v15 = vpack.c.bf16 %v2939_v12, %v484_v10  ;;  %720 = vmatpush.bf16.msrb.mxu1 %v711_v51 }
  0x13   : > { %v495_v16 = vpack.c.bf16 %v2945_v14, %v2942_v13  ;;  %v2951_v17 = vld [vmem:[%s2930_s27 + $0x20] sm:$0xff]  ;;  %2223 = vmatmul.msk.bf16.vlgmr.msra.gmra.mxu0 %vm394_vm1, %v388_v11  ;;  %v2955_v18 = vld [vmem:[%s2930_s27 + $0x30] sm:$0xff] }
  0x14   : > { %2232 = vmatmul.msk.bf16.vlgmr.msra.gmra.mxu2 %vm394_vm1, %v492_v15  ;;  %v375_v19 = vpack.c.bf16 %v2955_v18, %v2951_v17  ;;  %v2967_v22 = vld [vmem:[%s2930_s27 + $0xb0] sm:$0xff]  ;;  %v2970_v23 = vld [vmem:[%s2930_s27 + $0xc0] sm:$0xff] }
  0x15   : > { %2235 = vmatmul.msk.bf16.vlgmr.msra.gmra.mxu3 %vm394_vm1, %v495_v16  ;;  %v2973_v24 = vld [vmem:[%s2930_s27 + $0x21] sm:$0xff]  ;;  %v2976_v25 = vld [vmem:[%s2930_s27 + $0x31] sm:$0xff]  ;;  %v389_v28 = vpack.c.bf16 %v2970_v23, %v2967_v22  ;;  %654 = vmatpush.bf16.msra.mxu0 %v645_v49  ;;  %v826_v60 = vpack.c.bf16 %v2967_v22, %v2934_v9 }
  0x16   : > { %2228 = vmatmul.msk.bf16.vlgmr.msra.gmra.mxu1 %vm394_vm1, %v375_v19  ;;  %854 = vmatpush.bf16.msra.mxu3 %v845_v21  ;;  %v2236_v26 = vld [vmem:[%s2930_s27 + $0x120] sm:$0xff]  ;;  %v2237_v27 = vld [vmem:[%s2930_s27 + $0x130] sm:$0xff]  ;;  %v493_v31 = vpack.c.bf16 %v2976_v25, %v2973_v24  ;;  %v892_v50 = vpack.c.bf16 %v2973_v24, %v2939_v12 }
  0x17   : > { %v2983_v29 = vld [vmem:[%s2930_s27 + $0x40] sm:$0xff]  ;;  %v2986_v30 = vld [vmem:[%s2930_s27 + $0x50] sm:$0xff]  ;;  %v559_v32 = vpack.c.bf16 %v2237_v27, %v2236_v26 }
  0x18   : > { %v376_v33 = vpack.c.bf16 %v2986_v30, %v2983_v29  ;;  %v2997_v34 = vld [vmem:[%s2930_s27 + $0xd0] sm:$0xff]  ;;  %v3000_v35 = vld [vmem:[%s2930_s27 + $0xe0] sm:$0xff]  ;;  %v760_v7 = vpack.c.bf16 %v2983_v29, %v2955_v18 }
  0x19   : > { %v3003_v36 = vld [vmem:[%s2930_s27 + $0x41] sm:$0xff]  ;;  %v3006_v37 = vld [vmem:[%s2930_s27 + $0x51] sm:$0xff]  ;;  %v390_v40 = vpack.c.bf16 %v3000_v35, %v2997_v34  ;;  %v827_v8 = vpack.c.bf16 %v2997_v34, %v2970_v23 }
  0x1a   : > { %v2238_v38 = vld [vmem:[%s2930_s27 + $0x140] sm:$0xff]  ;;  %v2239_v39 = vld [vmem:[%s2930_s27 + $0x150] sm:$0xff]  ;;  %v494_v43 = vpack.c.bf16 %v3006_v37, %v3003_v36  ;;  %v893_v12 = vpack.c.bf16 %v3003_v36, %v2976_v25 }
  0x1b   : > { %v372_v41 = vld [vmem:[%s2930_s27 + $0x60] sm:$0xff]  ;;  %v3014_v42 = vld [vmem:[%s2930_s27 + $0x70] sm:$0xff]  ;;  %v560_v44 = vpack.c.bf16 %v2239_v39, %v2238_v38 }
  0x1c   : > { %v377_v45 = vpack.c.bf16 %v3014_v42, %v372_v41  ;;  %v3036_v52 = vld [vmem:[%s2930_s27 + $0xf0] sm:$0xff]  ;;  %v3039_v53 = vld [vmem:[%s2930_s27 + $0x100] sm:$0xff]  ;;  %v761_v18 = vpack.c.bf16 %v372_v41, %v2986_v30 }
  0x1d   : > { %v2240_v54 = vld [vmem:[%s2930_s27 + $0x160] sm:$0xff]  ;;  %v2241_v55 = vld [vmem:[%s2930_s27 + $0x170] sm:$0xff]  ;;  %v391_v56 = vpack.c.bf16 %v3039_v53, %v3036_v52  ;;  %v828_v38 = vpack.c.bf16 %v3036_v52, %v3000_v35  ;;  %v894_v52 = vpack.c.bf16 %v2942_v13, %v3006_v37 }
  0x1e   : > { %v367_v57 = vld [vmem:[%s2930_s27 + $0x10] sm:$0xff]  ;;  %v561_v58 = vpack.c.bf16 %v2241_v55, %v2240_v54  ;;  %v2262_v61 = vld [vmem:[%s2930_s27 + $0x121] sm:$0xff] }
  0x1f   : > { %v759_v59 = vpack.c.bf16 %v2951_v17, %v367_v57  ;;  %v2263_v62 = vld [vmem:[%s2930_s27 + $0x131] sm:$0xff]  ;;  %v366_v2 = vld [vmem:[%s2930_s27] sm:$0xff] }
  0x20   : > { %v692_v0 = vpack.c.bf16 %v2263_v62, %v2262_v61  ;;  %v2242_v3 = vld [vmem:[%s2930_s27 + $0x180] sm:$0xff]  ;;  %v2243_v4 = vld [vmem:[%s2930_s27 + $0x190] sm:$0xff]  ;;  %v374_v5 = vpack.c.bf16 %v367_v57, %v366_v2 }
  0x21   : > { %v562_v6 = vpack.c.bf16 %v2243_v4, %v2242_v3  ;;  %v2264_v9 = vld [vmem:[%s2930_s27 + $0x141] sm:$0xff]  ;;  %v2265_v10 = vld [vmem:[%s2930_s27 + $0x151] sm:$0xff] }
  0x22   : > { %v693_v11 = vpack.c.bf16 %v2265_v10, %v2264_v9  ;;  %v2249_v15 = vld [vmem:[%s2930_s27 + $0x1b0] sm:$0xff]  ;;  %v2250_v16 = vld [vmem:[%s2930_s27 + $0x1c0] sm:$0xff] }
  0x23   : > { %2224 = vmatmul.msk.bf16.gmra.mxu0 %vm394_vm1, %v389_v28  ;;  %v626_v17 = vpack.c.bf16 %v2250_v16, %v2249_v15  ;;  %v2266_v19 = vld [vmem:[%s2930_s27 + $0x161] sm:$0xff]  ;;  %v2267_v20 = vld [vmem:[%s2930_s27 + $0x171] sm:$0xff] }
  0x24   : > { %2233 = vmatmul.msk.bf16.gmra.mxu2 %vm394_vm1, %v493_v31  ;;  %v694_v21 = vpack.c.bf16 %v2267_v20, %v2266_v19  ;;  %v2251_v22 = vld [vmem:[%s2930_s27 + $0x1d0] sm:$0xff]  ;;  %v2252_v23 = vld [vmem:[%s2930_s27 + $0x1e0] sm:$0xff] }
  0x25   : > { %2245 = vmatmul.msk.bf16.vlgmr.msrb.gmra.mxu3 %vm394_vm1, %v559_v32  ;;  %v627_v26 = vpack.c.bf16 %v2252_v23, %v2251_v22  ;;  %v2282_v27 = vld [vmem:[%s2930_s27 + $0x80] sm:$0xff]  ;;  %v2269_v30 = vld [vmem:[%s2930_s27 + $0x191] sm:$0xff] }
  0x26   : > { %2229 = vmatmul.msk.bf16.gmra.mxu1 %vm394_vm1, %v376_v33  ;;  %2819 = vmatpush.bf16.msrb.mxu3 %v911_v1  ;;  %v762_v28 = vpack.c.bf16 %v2282_v27, %v3014_v42  ;;  %v2268_v29 = vld [vmem:[%s2930_s27 + $0x181] sm:$0xff]  ;;  %v2253_v32 = vld [vmem:[%s2930_s27 + $0x1f0] sm:$0xff]  ;;  %v2760_v22 = vld [vmem:[%s3755_s2 + $0x78] sm:$0xff] }
  0x27   : > { %v695_v31 = vpack.c.bf16 %v2269_v30, %v2268_v29  ;;  %v2254_v33 = vld [vmem:[%s2930_s27 + $0x200] sm:$0xff]  ;;  %v2255_v39 = vld [vmem:[%s2930_s27 + $0x210] sm:$0xff]  ;;  %1116 = vmatpush.bf16.msra.mxu1 %v2760_v22  ;;  %v2750_v29 = vld [vmem:[%s3755_s2 + $0x28] sm:$0xff] }
  0x28   : > { %v628_v34 = vpack.c.bf16 %v2254_v33, %v2253_v32  ;;  %v2295_v41 = vld [vmem:[%s2930_s27 + $0x110] sm:$0xff]  ;;  %v2758_v33 = vld [vmem:[%s3755_s2 + $0x68] sm:$0xff]  ;;  %v2772_v22 = vld [vmem:[%s3755_s2 + $0xd8] sm:$0xff] }
  0x29   : > { %v2751_v23 = vld [vmem:[%s3755_s2 + $0x30] sm:$0xff] }
  0x33   : > { %2225 = vmatmul.msk.bf16.gmra.mxu0 %vm394_vm1, %v390_v40  ;;  %v2256_v40 = vld [vmem:[%s2930_s27 + $0x220] sm:$0xff] }
  0x34   : > { %2234 = vmatmul.msk.bf16.gmra.mxu2 %vm394_vm1, %v494_v43  ;;  %v629_v42 = vpack.c.bf16 %v2256_v40, %v2255_v39 }
  0x35   : > { %2246 = vmatmul.msk.bf16.gmra.mxu3 %vm394_vm1, %v560_v44  ;;  %v829_v44 = vpack.c.bf16 %v2295_v41, %v3039_v53 }
  0x36   : > { %2230 = vmatmul.msk.bf16.gmra.mxu1 %vm394_vm1, %v377_v45 }
  0x43   : > { %2226 = vmatmul.msk.bf16.gmra.mxu0 %vm394_vm1, %v391_v56 }
  0x44   : > { %2284 = vmatmul.msk.bf16.vlgmr.msrb.gmra.mxu2 %vm394_vm1, %v759_v59 }
  0x45   : > { %2247 = vmatmul.msk.bf16.gmra.mxu3 %vm394_vm1, %v561_v58 }
  0x46   : > { %2271 = vmatmul.msk.bf16.vlgmr.msrb.gmra.mxu1 %vm394_vm1, %v692_v0 }
  0x53   : > { %2227 = vmatmul.msk.bf16.vlgmr.msrb.gmra.mxu0 %vm394_vm1, %v374_v5 }
  0x54   : > { %920 = vmatpush.bf16.msrb.mxu0 %v911_v1  ;;  %2285 = vmatmul.msk.bf16.gmra.mxu2 %vm394_vm1, %v760_v7 }
  0x55   : > { %2248 = vmatmul.msk.bf16.gmra.mxu3 %vm394_vm1, %v562_v6 }
  0x56   : > { %2272 = vmatmul.msk.bf16.gmra.mxu1 %vm394_vm1, %v693_v11 }
  0x63   : > { %2258 = vmatmul.msk.bf16.vlgmr.msra.gmra.mxu0 %vm394_vm1, %v626_v17  ;;  %v2752_v17 = vld [vmem:[%s3755_s2 + $0x38] sm:$0xff] }
  0x64   : > { %2286 = vmatmul.msk.bf16.gmra.mxu2 %vm394_vm1, %v761_v18 }
  0x65   : > { %2297 = vmatmul.msk.bf16.vlgmr.msra.gmra.mxu3 %vm394_vm1, %v826_v60  ;;  %v2308_v60 = vld [vmem:[%s2930_s27 + $0x81] sm:$0xff]  ;;  %1193 = vmatpush.bf16.msra.mxu2 %v2752_v17 }
  0x66   : > { %2273 = vmatmul.msk.bf16.gmra.mxu1 %vm394_vm1, %v694_v21  ;;  %v895_v24 = vpack.c.bf16 %v2308_v60, %v2945_v14  ;;  %v2755_v60 = vld [vmem:[%s3755_s2 + $0x50] sm:$0xff] }
  0x69   : > { %1194 = vmatpush.bf16.msra.mxu2 %v2751_v23 }
  0x6d   : > { %1195 = vmatpush.bf16.msra.mxu2 %v2750_v29  ;;  %v2745_v29 = vld [vmem:[%s3755_s2] sm:$0xff] }
  0x73   : > { %2259 = vmatmul.msk.bf16.gmra.mxu0 %vm394_vm1, %v627_v26 }
  0x74   : > { %2287 = vmatmul.msk.bf16.gmra.mxu2 %vm394_vm1, %v762_v28  ;;  %v2759_v28 = vld [vmem:[%s3755_s2 + $0x70] sm:$0xff] }
  0x75   : > { %2298 = vmatmul.msk.bf16.gmra.mxu3 %vm394_vm1, %v827_v8  ;;  %1117 = vmatpush.bf16.msra.mxu1 %v2759_v28 }
  0x76   : > { %2274 = vmatmul.msk.bf16.gmra.mxu1 %vm394_vm1, %v695_v31 }
  0x79   : > { %1118 = vmatpush.bf16.msra.mxu1 %v2758_v33  ;;  %v2761_v33 = vld [vmem:[%s3755_s2 + $0x80] sm:$0xff] }
  0x83   : > { %2260 = vmatmul.msk.bf16.gmra.mxu0 %vm394_vm1, %v628_v34 }
  0x85   : > { %2299 = vmatmul.msk.bf16.gmra.mxu3 %vm394_vm1, %v828_v38  ;;  %v2749_v38 = vld [vmem:[%s3755_s2 + $0x20] sm:$0xff] }
  0x86   : > { %1196 = vmatpush.bf16.msra.mxu2 %v2749_v38  ;;  %v2771_v38 = vld [vmem:[%s3755_s2 + $0xd0] sm:$0xff] }
  0x90   : > { %v420_v43 = vpop.f32.mrf.mxu0 }
  0x93   : > { %2261 = vmatmul.msk.bf16.gmra.mxu0 %vm394_vm1, %v629_v42  ;;  %v469_v45 = vpop.f32.mrf.mxu1  ;;  %v2757_v42 = vld [vmem:[%s3755_s2 + $0x60] sm:$0xff] }
  0x94   : > { %1119 = vmatpush.bf16.msra.mxu1 %v2757_v42 }
  0x95   : > { %2300 = vmatmul.msk.bf16.gmra.mxu3 %vm394_vm1, %v829_v44  ;;  %v2748_v44 = vld [vmem:[%s3755_s2 + $0x18] sm:$0xff] }
  0x96   : > { %1197 = vmatpush.bf16.msra.mxu2 %v2748_v44 }
  0x97   : > { %v522_v46 = vpop.f32.mrf.mxu2 }
  0x98   : > { %v537_v47 = vpop.f32.mrf.mxu3  ;;  %v3103_v35 = vpop.f32.mrf.mxu0 }
  0x9b   : > { %v3113_v53 = vpop.f32.mrf.mxu1 }
  0x9f   : > { %v3105_v48 = vpop.f32.mrf.mxu2 }
  0xa0   : > { %v3107_v49 = vpop.f32.mrf.mxu3  ;;  %v425_v51 = vpop.f32.mrf.mxu0 }
  0xa1   : > { %v470_v54 = vadd.f32 %v469_v45, %v425_v51  ;;  %v2768_v45 = vld [vmem:[%s3755_s2 + $0xb8] sm:$0xff] }
  0xa2   : > { %1299 = vmatpush.bf16.msra.mxu3 %v2768_v45 }
  0xa3   : > { %2310 = vmatmul.msk.bf16.vlgmr.msrb.gmra.mxu0 %vm394_vm1, %v892_v50  ;;  %v474_v59 = vpop.f32.mrf.mxu1  ;;  %v2767_v50 = vld [vmem:[%s3755_s2 + $0xb0] sm:$0xff] }
  0xa5   : > { %2312 = vmatmul.msk.bf16.vlgmr.msrb.gmra.mxu3 %vm394_vm1, %v894_v52  ;;  %v2756_v52 = vld [vmem:[%s3755_s2 + $0x58] sm:$0xff] }
  0xa6   : > { %1300 = vmatpush.bf16.msra.mxu3 %v2767_v50  ;;  %1120 = vmatpush.bf16.msra.mxu1 %v2756_v52  ;;  %v2770_v50 = vld [vmem:[%s3755_s2 + $0xc8] sm:$0xff] }
  0xa7   : > { %v527_v55 = vpop.f32.mrf.mxu2 }
  0xa8   : > { %v589_v56 = vpop.f32.mrf.mxu3  ;;  %v544_v57 = vadd.f32 %v527_v55, %v470_v54  ;;  %v3117_v58 = vpop.f32.mrf.mxu0  ;;  %v2747_v55 = vld [vmem:[%s3755_s2 + $0x10] sm:$0xff] }
  0xa9   : > { %1198 = vmatpush.bf16.msra.mxu2 %v2747_v55 }
  0xaa   : > { %1121 = vmatpush.bf16.msra.mxu1 %v2755_v60 }
  0xab   : > { %v3127_v37 = vpop.f32.mrf.mxu1 }
  0xaf   : > { %v3133_v1 = vpop.f32.mrf.mxu2 }
  0xb0   : > { %v3120_v61 = vpop.f32.mrf.mxu3  ;;  %v430_v13 = vpop.f32.mrf.mxu0 }
  0xb1   : > { %v475_v5 = vadd.f32 %v474_v59, %v430_v13  ;;  %v2775_v13 = vld [vmem:[%s3755_s2 + $0xf0] sm:$0xff] }
  0xb3   : > { %2311 = vmatmul.msk.bf16.gmra.mxu0 %vm394_vm1, %v893_v12  ;;  %v479_v2 = vpop.f32.mrf.mxu1  ;;  %v2765_v12 = vld [vmem:[%s3755_s2 + $0xa0] sm:$0xff] }
  0xb5   : > { %2313 = vmatmul.msk.bf16.gmra.mxu3 %vm394_vm1, %v895_v24 }
  0xb7   : > { %v532_v4 = vpop.f32.mrf.mxu2 }
  0xb8   : > { %v594_v62 = vpop.f32.mrf.mxu3  ;;  %v3131_v0 = vpop.f32.mrf.mxu0  ;;  %v546_v6 = vadd.f32 %v532_v4, %v475_v5  ;;  %v2754_v4 = vld [vmem:[%s3755_s2 + $0x48] sm:$0xff] }
  0xb9   : > { %v3129_v63 = vadd.f32 %v594_v62, %v544_v57  ;;  %v2776_v57 = vld [vmem:[%s3755_s2 + $0xf8] sm:$0xff]  ;;  %1122 = vmatpush.bf16.msra.mxu1 %v2754_v4 }
  0xba   : > { %1413 = vmatpush.bf16.msra.mxu0 %v2776_v57 }
  0xbb   : > { %v3168_v30 = vpop.f32.mrf.mxu1 }
  0xbe   : > { %1414 = vmatpush.bf16.msra.mxu0 %v2775_v13  ;;  %v477_v13 = vadd.f32 %v3127_v37, %v3131_v0  ;;  %v2784_v37 = vld [vmem:[%s3755_s2 + $0x138] sm:$0xff] }
  0xbf   : > { %v3177_v34 = vpop.f32.mrf.mxu2 }
  0xc0   : > { %v3135_v3 = vpop.f32.mrf.mxu3  ;;  %v435_v25 = vpop.f32.mrf.mxu0 }
  0xc1   : > { %v480_v36 = vadd.f32 %v479_v2, %v435_v25  ;;  %v2844_v2 = vmov 0.0   ;;  %v2764_v25 = vld [vmem:[%s3755_s2 + $0x98] sm:$0xff] }
  0xc2   : > { %984 = vst [vmem:[#allocation2 + $0x10] sm:$0xff] %v2844_v2 }
  0xc3   : > { %v548_v14 = vadd.f32 %v537_v47, %v480_v36  ;;  %v3182_v39 = vpop.f32.mrf.mxu1  ;;  %985 = vst [vmem:[#allocation2 + $0x18] sm:$0x3] %v2844_v2  ;;  %v2774_v36 = vld [vmem:[%s3755_s2 + $0xe8] sm:$0xff] }
  0xc4   : > { %982 = vst [vmem:[#allocation2] sm:$0xff] %v2844_v2  ;;  %1415 = vmatpush.bf16.msra.mxu0 %v2774_v36 }
  0xc5   : > { %983 = vst [vmem:[#allocation2 + $0x8] sm:$0x3] %v2844_v2 }
  0xc6   : > { %986 = vst [vmem:[#allocation2 + $0x20] sm:$0xff] %v2844_v2 }
  0xc7   : > { %987 = vst [vmem:[#allocation2 + $0x28] sm:$0x3] %v2844_v2 }
  0xc8   : > { %v599_v7 = vpop.f32.mrf.mxu3  ;;  %v3139_v9 = vpop.f32.mrf.mxu0  ;;  %988 = vst [vmem:[#allocation2 + $0x30] sm:$0xff] %v2844_v2 }
  0xc9   : > { %v3137_v8 = vadd.f32 %v599_v7, %v546_v6  ;;  %v2763_v6 = vld [vmem:[%s3755_s2 + $0x90] sm:$0xff]  ;;  %v2773_v7 = vld [vmem:[%s3755_s2 + $0xe0] sm:$0xff]  ;;  %989 = vst [vmem:[#allocation2 + $0x38] sm:$0x3] %v2844_v2 }
  0xca   : > { %990 = vst [vmem:[#allocation2 + $0x40] sm:$0xff] %v2844_v2  ;;  %1416 = vmatpush.bf16.msra.mxu0 %v2773_v7 }
  0xcb   : > { %991 = vst [vmem:[#allocation2 + $0x48] sm:$0x3] %v2844_v2 }
  0xcc   : > { %992 = vst [vmem:[#allocation2 + $0x50] sm:$0xff] %v2844_v2 }
  0xcd   : > { %993 = vst [vmem:[#allocation2 + $0x58] sm:$0x3] %v2844_v2 }
  0xce   : > { %994 = vst [vmem:[#allocation2 + $0x60] sm:$0xff] %v2844_v2  ;;  %1417 = vmatpush.bf16.msra.mxu0 %v2772_v22  ;;  %v472_v22 = vadd.f32 %v3113_v53, %v3117_v58  ;;  %v2783_v53 = vld [vmem:[%s3755_s2 + $0x130] sm:$0xff]  ;;  %v2790_v58 = vld [vmem:[%s3755_s2 + $0x168] sm:$0xff] }
  0xcf   : > { %995 = vst [vmem:[#allocation2 + $0x68] sm:$0x3] %v2844_v2 }
  0xd0   : > { %v3141_v10 = vpop.f32.mrf.mxu3  ;;  %v464_v11 = vpop.f32.mrf.mxu0  ;;  %996 = vst [vmem:[#allocation2 + $0x70] sm:$0xff] %v2844_v2 }
  0xd1   : > { %v465_v15 = vadd.f32 %v464_v11, %v420_v43  ;;  %v3191_v43 = vpop.f32.mrf.mxu2  ;;  %v2753_v11 = vld [vmem:[%s3755_s2 + $0x40] sm:$0xff]  ;;  %997 = vst [vmem:[#allocation2 + $0x78] sm:$0x3] %v2844_v2 }
  0xd2   : > { %1123 = vmatpush.bf16.msra.mxu1 %v2753_v11  ;;  %998 = vst [vmem:[#allocation2 + $0x80] sm:$0xff] %v2844_v2  ;;  %1418 = vmatpush.bf16.msra.mxu0 %v2771_v38 }
  0xd3   : > { %v542_v16 = vadd.f32 %v522_v46, %v465_v15  ;;  %v3199_v46 = vpop.f32.mrf.mxu1  ;;  %999 = vst [vmem:[#allocation2 + $0x88] sm:$0x3] %v2844_v2 }
  0xd4   : > { %1000 = vst [vmem:[#allocation2 + $0x90] sm:$0xff] %v2844_v2 }
  0xd5   : > { %v3146_v18 = vadd.f32 %v589_v56, %v542_v16  ;;  %v2766_v56 = vld [vmem:[%s3755_s2 + $0xa8] sm:$0xff]  ;;  %1001 = vst [vmem:[#allocation2 + $0x98] sm:$0x3] %v2844_v2 }
  0xd6   : > { %1301 = vmatpush.bf16.msra.mxu3 %v2766_v56  ;;  %v2746_v16 = vld [vmem:[%s3755_s2 + $0x8] sm:$0xff]  ;;  %1419 = vmatpush.bf16.msra.mxu0 %v2770_v50 }
  0xd7   : > { %1199 = vmatpush.bf16.msra.mxu2 %v2746_v16  ;;  %1527 = vmatpush.bf16.msrb.mxu1 %v2784_v37 }
  0xd8   : > { %v604_v19 = vpop.f32.mrf.mxu3  ;;  %v3150_v21 = vpop.f32.mrf.mxu0 }
  0xd9   : > { %v3148_v20 = vadd.f32 %v604_v19, %v548_v14  ;;  %v3211_v54 = vpop.f32.mrf.mxu2  ;;  %v2762_v19 = vld [vmem:[%s3755_s2 + $0x88] sm:$0xff]  ;;  %v467_v44 = vadd.f32 %v3150_v21, %v3103_v35 }
  0xda   : > { %1302 = vmatpush.bf16.msra.mxu3 %v2765_v12 }
  0xdb   : > { %v3235_v62 = vpop.f32.mrf.mxu1  ;;  %1200 = vmatpush.bf16.msra.mxu2 %v2745_v29  ;;  %v543_v35 = vadd.f32 %v3105_v48, %v467_v44  ;;  %v2792_v48 = vld [vmem:[%s3755_s2 + $0x178] sm:$0xff]  ;;  %v1039_v44 = vld [vmem:[#allocation2 + $0x1] sm:$0xff]  ;;  %1528 = vmatpush.bf16.msrb.mxu1 %v2783_v53 }
  0xdd   : > { %v610_v56 = vadd.f32 %v3120_v61, %v543_v35 }
  0xde   : > { %1303 = vmatpush.bf16.msra.mxu3 %v2764_v25  ;;  %v547_v25 = vadd.f32 %v3177_v34, %v477_v13  ;;  %v2791_v34 = vld [vmem:[%s3755_s2 + $0x170] sm:$0xff] }
  0xdf   : > { %1641 = vmatpush.bf16.msrb.mxu2 %v2792_v48  ;;  %v2789_v48 = vld [vmem:[%s3755_s2 + $0x160] sm:$0xff] }
  0xe0   : > { %v3158_v26 = vpop.f32.mrf.mxu3  ;;  %v3160_v27 = vpop.f32.mrf.mxu0 }
  0xe1   : > { %v3249_v14 = vpop.f32.mrf.mxu2  ;;  %v676_v45 = vadd.f32 %v3160_v27, %v3146_v18  ;;  %v2769_v18 = vld [vmem:[%s3755_s2 + $0xc0] sm:$0xff] }
  0xe2   : > { %1304 = vmatpush.bf16.msra.mxu3 %v2763_v6  ;;  %1420 = vmatpush.bf16.msra.mxu0 %v2769_v18 }
  0xe3   : > { %v3273_v17 = vpop.f32.mrf.mxu1  ;;  %v742_v52 = vadd.f32 %v3182_v39, %v676_v45  ;;  %1642 = vmatpush.bf16.msrb.mxu2 %v2791_v34 }
  0xe5   : > { %v809_v39 = vadd.f32 %v3191_v43, %v742_v52 }
  0xe6   : > { %1305 = vmatpush.bf16.msra.mxu3 %v2762_v19 }
  0xe7   : > { %1643 = vmatpush.bf16.msrb.mxu2 %v2790_v58 }
  0xe8   : > { %v3170_v31 = vpop.f32.mrf.mxu3  ;;  %v3172_v32 = vpop.f32.mrf.mxu0 }
  0xe9   : > { %v3285_v23 = vpop.f32.mrf.mxu2  ;;  %v677_v12 = vadd.f32 %v3172_v32, %v610_v56  ;;  %v876_v36 = vadd.f32 %v3170_v31, %v809_v39  ;;  %v614_v32 = vadd.f32 %v3141_v10, %v547_v25  ;;  %v3350_v31 = vld [vmem:[%s3758_s5] ss:$0 sm:$0xff] }
  0xea   : > { %1306 = vmatpush.bf16.msra.mxu3 %v2761_v33  ;;  %v2781_v25 = vld [vmem:[%s3755_s2 + $0x120] sm:$0xff] }
  0xeb   : > { %v732_v21 = vpop.f32.mrf.mxu1  ;;  %v743_v4 = vadd.f32 %v3199_v46, %v677_v12  ;;  %1644 = vmatpush.bf16.msrb.mxu2 %v2789_v48  ;;  %v2807_v48 = vld [vmem:[%s3755_s2 + $0x1f0] sm:$0xff] }
  0xed   : > { %v810_v10 = vadd.f32 %v3211_v54, %v743_v4 }
  0xf0   : > { %v3184_v40 = vpop.f32.mrf.mxu3  ;;  %v3186_v41 = vpop.f32.mrf.mxu0 }
  0xf1   : > { %v799_v57 = vpop.f32.mrf.mxu2  ;;  %v678_v11 = vadd.f32 %v3186_v41, %v3129_v63  ;;  %v877_v54 = vadd.f32 %v3184_v40, %v810_v10 }
  0xf3   : > { %v734_v6 = vpop.f32.mrf.mxu1  ;;  %v744_v45 = vadd.f32 %v3235_v62, %v678_v11 }
  0xf8   : > { %v3201_v47 = vpop.f32.mrf.mxu3  ;;  %v3206_v51 = vpop.f32.mrf.mxu0 }
  0xf9   : > { %v801_v16 = vpop.f32.mrf.mxu2 }
  0xfb   : > { %v737_v40 = vpop.f32.mrf.mxu1 }
 0x100   : > { %v3222_v59 = vpop.f32.mrf.mxu3  ;;  %v3233_v24 = vpop.f32.mrf.mxu0 }
 0x101   : > { %v680_v60 = vadd.f32 %v3233_v24, %v3137_v8  ;;  %v3341_v8 = vld [vmem:[%s3757_s4] ss:$0 sm:$0xff] }
 0x103   : > { %v746_v61 = vadd.f32 %v732_v21, %v680_v60  ;;  %v739_v10 = vpop.f32.mrf.mxu1 }
 0x105   : > { %v813_v46 = vadd.f32 %v799_v57, %v746_v61 }
 0x108   : > { %v3253_v5 = vpop.f32.mrf.mxu3  ;;  %v3265_v15 = vpop.f32.mrf.mxu0 }
 0x109   : > { %v681_v24 = vadd.f32 %v3265_v15, %v614_v32  ;;  %v880_v33 = vadd.f32 %v3253_v5, %v813_v46  ;;  %v545_v15 = vadd.f32 %v3133_v1, %v472_v22  ;;  %v482_v1 = vadd.f32 %v3168_v30, %v3139_v9  ;;  %v2799_v22 = vld [vmem:[%s3755_s2 + $0x1b0] sm:$0xff] }
 0x10a   : > { %v811_v9 = vadd.f32 %v3249_v14, %v744_v45 }
 0x10b   : > { %v747_v38 = vadd.f32 %v734_v6, %v681_v24  ;;  %v612_v5 = vadd.f32 %v3135_v3, %v545_v15  ;;  %v2782_v3 = vld [vmem:[%s3755_s2 + $0x128] sm:$0xff]  ;;  %v549_v39 = vadd.f32 %v3107_v49, %v482_v1 }
 0x10c   : > { %1529 = vmatpush.bf16.msrb.mxu1 %v2782_v3  ;;  %v878_v61 = vadd.f32 %v3201_v47, %v811_v9  ;;  %v2797_v9 = vld [vmem:[%s3755_s2 + $0x1a0] sm:$0xff] }
 0x10d   : > { %v814_v52 = vadd.f32 %v801_v16, %v747_v38  ;;  %v679_v30 = vadd.f32 %v3206_v51, %v612_v5  ;;  %v1222_v51 = vld [vmem:[#allocation2 + $0x2] sm:$0xff]  ;;  %v616_v49 = vadd.f32 %v3158_v26, %v549_v39  ;;  %v2788_v16 = vld [vmem:[%s3755_s2 + $0x158] sm:$0xff] }
 0x10e   : > { %1645 = vmatpush.bf16.msrb.mxu2 %v2788_v16  ;;  %v2803_v16 = vld [vmem:[%s3755_s2 + $0x1d0] sm:$0xff] }
 0x110   : > { %v3287_v28 = vpop.f32.mrf.mxu3  ;;  %v3299_v42 = vpop.f32.mrf.mxu0  ;;  %1530 = vmatpush.bf16.msrb.mxu1 %v2781_v25 }
 0x111   : > { %v682_v18 = vadd.f32 %v3299_v42, %v3148_v20  ;;  %v804_v42 = vpop.f32.mrf.mxu2  ;;  %v881_v12 = vadd.f32 %v3287_v28, %v814_v52  ;;  %v2808_v52 = vld [vmem:[%s3755_s2 + $0x1f8] sm:$0xff] }
 0x112   : > { %1870 = vmatpush.bf16.msrb.mxu0 %v2808_v52 }
 0x113   : > { %v748_v13 = vadd.f32 %v737_v40, %v682_v18 }
 0x116   : > { %1871 = vmatpush.bf16.msrb.mxu0 %v2807_v48 }
 0x118   : > { %v3316_v55 = vpop.f32.mrf.mxu3  ;;  %v3321_v27 = vpop.f32.mrf.mxu0 }
 0x119   : > { %v683_v46 = vadd.f32 %v3321_v27, %v616_v49  ;;  %v2780_v27 = vld [vmem:[%s3755_s2 + $0x118] sm:$0xff]  ;;  %v806_v15 = vpop.f32.mrf.mxu2 }
 0x11a   : > { %1531 = vmatpush.bf16.msrb.mxu1 %v2780_v27 }
 0x120   : > { %v3336_v7 = vpop.f32.mrf.mxu3  ;;  %v922_v43 = vpop.f32.mrf.mxu0 }
 0x121   : > { %v942_v0 = vadd.f32 %v922_v43, %v876_v36  ;;  %v745_v36 = vadd.f32 %v3273_v17, %v679_v30  ;;  %v815_v17 = vadd.f32 %v804_v42, %v748_v13 }
 0x123   : > { %v954_v19 = vmul.f32 %v3341_v8, %v942_v0  ;;  %v812_v26 = vadd.f32 %v3285_v23, %v745_v36  ;;  %v2796_v36 = vld [vmem:[%s3755_s2 + $0x198] sm:$0xff] }
 0x125   : > { %v966_v29 = vadd.f32 %v3350_v31, %v954_v19 }
 0x127   : > { %v3367_v63 = vmax.f32 %v966_v29, 0.0  ;;  %v882_v29 = vadd.f32 %v3316_v55, %v815_v17 }
 0x128   : > { %v932_v41 = vpop.f32.mrf.mxu3  ;;  %v924_v35 = vpop.f32.mrf.mxu0 }
 0x129   : > { %v946_v50 = vadd.f32 %v932_v41, %v880_v33  ;;  %1003 = vst [vmem:[#allocation2 + $0x11] sm:$0xff] %v3367_v63  ;;  %v943_v62 = vadd.f32 %v924_v35, %v877_v54  ;;  %v1047_v21 = vpack.c.bf16 %v3367_v63, %v1039_v44  ;;  %v749_v33 = vadd.f32 %v739_v10, %v683_v46  ;;  %v2785_v46 = vld [vmem:[%s3755_s2 + $0x140] sm:$0xff] }
 0x12a   : > { %v879_v44 = vadd.f32 %v3222_v59, %v812_v26  ;;  %v2804_v26 = vld [vmem:[%s3755_s2 + $0x1d8] sm:$0xff]  ;;  %v2793_v10 = vld [vmem:[%s3755_s2 + $0x180] sm:$0xff] }
 0x12b   : > { %v958_v56 = vmul.f32 %v3341_v8, %v946_v50  ;;  %v955_v57 = vmul.f32 %v3341_v8, %v943_v62  ;;  %1124 = vmatmul.bf16.vlgmr.msra.gmra.mxu1 %v1047_v21  ;;  %v816_v59 = vadd.f32 %v806_v15, %v749_v33  ;;  %v2787_v62 = vld [vmem:[%s3755_s2 + $0x150] sm:$0xff]  ;;  %v2798_v21 = vld [vmem:[%s3755_s2 + $0x1a8] sm:$0xff]  ;;  %v2816_v33 = vld [vmem:[%s3755_s2 + $0x238] sm:$0xff] }
 0x12c   : > { %1646 = vmatpush.bf16.msrb.mxu2 %v2787_v62  ;;  %v2814_v62 = vld [vmem:[%s3755_s2 + $0x228] sm:$0xff] }
 0x12d   : > { %v970_v20 = vadd.f32 %v3350_v31, %v958_v56  ;;  %v967_v60 = vadd.f32 %v3350_v31, %v955_v57  ;;  %v2779_v56 = vld [vmem:[%s3755_s2 + $0x110] sm:$0xff]  ;;  %v883_v30 = vadd.f32 %v3336_v7, %v816_v59 }
 0x12e   : > { %1532 = vmatpush.bf16.msrb.mxu1 %v2779_v56  ;;  %v2813_v56 = vld [vmem:[%s3755_s2 + $0x220] sm:$0xff] }
 0x12f   : > { %v3396_v14 = vmax.f32 %v970_v20, 0.0  ;;  %v3403_v4 = vmax.f32 %v967_v60, 0.0 }
 0x130   : > { %v934_v6 = vpop.f32.mrf.mxu3  ;;  %v927_v32 = vpop.f32.mrf.mxu0  ;;  %v1012_v43 = vld [vmem:[#allocation2 + $0x10] sm:$0xff] }
 0x131   : > { %1007 = vst [vmem:[#allocation2 + $0x51] sm:$0xff] %v3396_v14  ;;  %v947_v28 = vadd.f32 %v934_v6, %v881_v12  ;;  %v3407_v37 = vld [vmem:[#allocation2 + $0x12] sm:$0xff]  ;;  %v944_v0 = vadd.f32 %v927_v32, %v878_v61  ;;  %v1019_v34 = vpack.c.bf16 %v1012_v43, %v2844_v2  ;;  %v2786_v61 = vld [vmem:[%s3755_s2 + $0x148] sm:$0xff] }
 0x132   : > { %1004 = vst [vmem:[#allocation2 + $0x21] sm:$0xff] %v3403_v4  ;;  %v1230_v47 = vpack.c.bf16 %v3407_v37, %v1222_v51  ;;  %v2800_v2 = vld [vmem:[%s3755_s2 + $0x1b8] sm:$0xff]  ;;  %v2806_v6 = vld [vmem:[%s3755_s2 + $0x1e8] sm:$0xff]  ;;  %1647 = vmatpush.bf16.msrb.mxu2 %v2786_v61  ;;  %v2732_v61 = vld [vmem:[%s2930_s27 + $0x1d0] sm:$0xff] }
 0x133   : > { %v959_v24 = vmul.f32 %v3341_v8, %v947_v28  ;;  %v956_v11 = vmul.f32 %v3341_v8, %v944_v0  ;;  %1201 = vmatmul.bf16.vlgmr.msra.gmra.mxu2 %v1019_v34  ;;  %1756 = vmatpush.bf16.msrb.mxu3 %v2800_v2  ;;  %v2795_v28 = vld [vmem:[%s3755_s2 + $0x190] sm:$0xff] }
 0x134   : > { %1307 = vmatmul.bf16.vlgmr.msra.gmra.mxu3 %v1230_v47  ;;  %1872 = vmatpush.bf16.msrb.mxu0 %v2806_v6 }
 0x135   : > { %v971_v19 = vadd.f32 %v3350_v31, %v959_v24  ;;  %v968_v23 = vadd.f32 %v3350_v31, %v956_v11  ;;  %v2794_v24 = vld [vmem:[%s3755_s2 + $0x188] sm:$0xff] }
 0x136   : > { %1648 = vmatpush.bf16.msrb.mxu2 %v2785_v46 }
 0x137   : > { %v3431_v38 = vmax.f32 %v971_v19, 0.0  ;;  %v3434_v54 = vmax.f32 %v968_v23, 0.0  ;;  %1757 = vmatpush.bf16.msrb.mxu3 %v2799_v22  ;;  %v2033_v22 = vld [vmem:[%s3756_s3] sm:$0x3] }
 0x138   : > { %v937_v45 = vpop.f32.mrf.mxu3  ;;  %v929_v50 = vpop.f32.mrf.mxu0  ;;  %v1016_v2 = vld [vmem:[#allocation2 + $0x50] sm:$0xff] }
 0x139   : > { %1008 = vst [vmem:[#allocation2 + $0x61] sm:$0xff] %v3431_v38  ;;  %v948_v41 = vadd.f32 %v937_v45, %v882_v29  ;;  %v1337_v35 = vld [vmem:[#allocation2 + $0x20] sm:$0xff]  ;;  %v1460_v53 = vpack.c.bf16 %v3431_v38, %v3396_v14  ;;  %v945_v55 = vadd.f32 %v929_v50, %v879_v44  ;;  %v3442_v5 = vpack.c.bf16 %v3434_v54, %v3403_v4  ;;  %v1227_v27 = vld [vmem:[#allocation2 + $0x52] sm:$0xff]  ;;  %v2802_v29 = vld [vmem:[%s3755_s2 + $0x1c8] sm:$0xff] }
 0x13a   : > { %1005 = vst [vmem:[#allocation2 + $0x31] sm:$0xff] %v3434_v54  ;;  %v1344_v58 = vpack.c.bf16 %v1337_v35, %v1012_v43  ;;  %v3473_v12 = vld [vmem:[#allocation2 + $0x22] sm:$0xff]  ;;  %v2047_v44 = vsel %vm407_vm0, %v2033_v22, 0  ;;  %v2736_v22 = vld [vmem:[%s2930_s27 + $0x210] sm:$0xff] }
 0x13b   : > { %v960_v1 = vmul.f32 %v3341_v8, %v948_v41  ;;  %v957_v40 = vmul.f32 %v3341_v8, %v945_v55  ;;  %1129 = vmatmul.bf16.gmra.mxu1 %v3442_v5  ;;  %1758 = vmatpush.bf16.msrb.mxu3 %v2798_v21  ;;  %v2805_v43 = vld [vmem:[%s3755_s2 + $0x1e0] sm:$0xff] }
 0x13c   : > { %1421 = vmatmul.bf16.vlgmr.msra.gmra.mxu0 %v1344_v58  ;;  %2056 = vmatpush.bf16.msra.mxu2 %v2047_v44  ;;  %v2801_v45 = vld [vmem:[%s3755_s2 + $0x1c0] sm:$0xff] }
 0x13d   : > { %v972_v18 = vadd.f32 %v3350_v31, %v960_v1  ;;  %v969_v3 = vadd.f32 %v3350_v31, %v957_v40  ;;  %1873 = vmatpush.bf16.msrb.mxu0 %v2805_v43 }
 0x13f   : > { %v3465_v57 = vmax.f32 %v972_v18, 0.0  ;;  %v3470_v20 = vmax.f32 %v969_v3, 0.0  ;;  %1759 = vmatpush.bf16.msrb.mxu3 %v2797_v9  ;;  %v1458_v18 = vpack.c.bf16 %v3403_v4, %v3367_v63  ;;  %v1572_v3 = vpack.c.bf16 %v3473_v12, %v3407_v37  ;;  %v2812_v9 = vld [vmem:[%s3755_s2 + $0x218] sm:$0xff]  ;;  %v2811_v4 = vld [vmem:[%s3755_s2 + $0x210] sm:$0xff] }
 0x140   : > { %v939_v42 = vpop.f32.mrf.mxu3  ;;  %v1341_v15 = vld [vmem:[#allocation2 + $0x60] sm:$0xff] }
 0x141   : > { %1009 = vst [vmem:[#allocation2 + $0x71] sm:$0xff] %v3465_v57  ;;  %v949_v60 = vadd.f32 %v939_v42, %v883_v30  ;;  %v1014_v39 = vld [vmem:[#allocation2 + $0x30] sm:$0xff]  ;;  %v3516_v17 = vpack.c.bf16 %v3396_v14, %v3470_v20  ;;  %1874 = vmatpush.bf16.msrb.mxu0 %v2804_v26  ;;  %v1346_v41 = vpack.c.bf16 %v1341_v15, %v1016_v2  ;;  %v1228_v59 = vld [vmem:[#allocation2 + $0x62] sm:$0xff] }
 0x142   : > { %v3475_v13 = vld [vmem:[#allocation2 + $0x32] sm:$0xff]  ;;  %1006 = vst [vmem:[#allocation2 + $0x41] sm:$0xff] %v3470_v20  ;;  %v3478_v7 = vpack.c.bf16 %v1014_v39, %v1337_v35  ;;  %v1050_v50 = vpack.c.bf16 %v3465_v57, %v3431_v38  ;;  %v1459_v63 = vpack.c.bf16 %v3470_v20, %v3434_v54  ;;  %v2810_v30 = vld [vmem:[%s3755_s2 + $0x208] sm:$0xff]  ;;  %v2809_v54 = vld [vmem:[%s3755_s2 + $0x200] sm:$0xff] }
 0x143   : > { %v3482_v51 = vpack.c.bf16 %v3475_v13, %v3473_v12  ;;  %v961_v25 = vmul.f32 %v3341_v8, %v949_v60  ;;  %v2778_v8 = vld [vmem:[%s3755_s2 + $0x108] sm:$0xff]  ;;  %1760 = vmatpush.bf16.msrb.mxu3 %v2796_v36  ;;  %v2815_v35 = vld [vmem:[%s3755_s2 + $0x230] sm:$0xff]  ;;  %v2733_v36 = vld [vmem:[%s2930_s27 + $0x1e0] sm:$0xff] }
 0x144   : > { %1206 = vmatmul.bf16.gmra.mxu2 %v3478_v7  ;;  %1533 = vmatpush.bf16.msrb.mxu1 %v2778_v8  ;;  %v1800_v60 = vld [vmem:[#allocation2 + $0x91] sm:$0xff] }
 0x145   : > { %1312 = vmatmul.bf16.gmra.mxu3 %v3482_v51  ;;  %v973_v49 = vadd.f32 %v3350_v31, %v961_v25  ;;  %v2777_v31 = vld [vmem:[%s3755_s2 + $0x100] sm:$0xff]  ;;  %1875 = vmatpush.bf16.msrb.mxu0 %v2803_v16  ;;  %v1914_v16 = vld [vmem:[#allocation2 + $0x92] sm:$0xff] }
 0x147   : > { %v3503_v32 = vmax.f32 %v973_v49, 0.0  ;;  %1761 = vmatpush.bf16.msrb.mxu3 %v2795_v28 }
 0x148   : > { %1534 = vmatpush.bf16.msrb.mxu1 %v2777_v31  ;;  %v1018_v55 = vld [vmem:[#allocation2 + $0x70] sm:$0xff] }
 0x149   : > { %1010 = vst [vmem:[#allocation2 + $0x81] sm:$0xff] %v3503_v32  ;;  %v1339_v0 = vld [vmem:[#allocation2 + $0x40] sm:$0xff]  ;;  %v1461_v34 = vpack.c.bf16 %v3503_v32, %v3465_v57  ;;  %1876 = vmatpush.bf16.msrb.mxu0 %v2802_v29  ;;  %v1229_v58 = vld [vmem:[#allocation2 + $0x72] sm:$0xff]  ;;  %v1022_v1 = vpack.c.bf16 %v1018_v55, %v1341_v15  ;;  %v1804_v38 = vpack.c.bf16 %v1800_v60, %v3503_v32 }
 0x14a   : > { %v1345_v47 = vpack.c.bf16 %v1339_v0, %v1014_v39  ;;  %v1226_v11 = vld [vmem:[#allocation2 + $0x42] sm:$0xff]  ;;  %v1021_v19 = vpack.c.bf16 %v1016_v2, %v1339_v0  ;;  %v3555_v40 = vpack.c.bf16 %v1229_v58, %v1228_v59  ;;  %v2734_v0 = vld [vmem:[%s2930_s27 + $0x1f0] sm:$0xff] }
 0x14b   : > { %1134 = vmatmul.bf16.gmra.mxu1 %v3516_v17  ;;  %1762 = vmatpush.bf16.msrb.mxu3 %v2794_v24  ;;  %v3534_v23 = vpack.c.bf16 %v1227_v27, %v1226_v11  ;;  %v1573_v37 = vpack.c.bf16 %v1226_v11, %v3475_v13  ;;  %v2731_v39 = vld [vmem:[%s2930_s27 + $0x1c0] sm:$0xff] }
 0x14c   : > { %1426 = vmatmul.bf16.gmra.mxu0 %v1345_v47  ;;  %1984 = vmatpush.bf16.msra.mxu1 %v2816_v33  ;;  %v2737_v29 = vld [vmem:[%s2930_s27 + $0x220] sm:$0xff] }
 0x14d   : > { %1877 = vmatpush.bf16.msrb.mxu0 %v2801_v45  ;;  %v2032_v15 = vpack.c.bf16 %v2737_v29, %v2736_v22  ;;  %v3670_v22 = vld [vmem:[%s3761_s8] ss:$0 sm:$0xff] }
 0x14f   : > { %1763 = vmatpush.bf16.msrb.mxu3 %v2793_v10 }
 0x150   : > { %1985 = vmatpush.bf16.msra.mxu1 %v2815_v35  ;;  %v1343_v21 = vld [vmem:[#allocation2 + $0x80] sm:$0xff] }
 0x151   : > { %v1347_v52 = vpack.c.bf16 %v1343_v21, %v1018_v55  ;;  %v1571_v48 = vld [vmem:[#allocation2 + $0x82] sm:$0xff]  ;;  %v1690_v42 = vpack.c.bf16 0.0, %v1343_v21 }
 0x152   : > { %v1575_v20 = vpack.c.bf16 %v1571_v48, %v1229_v58 }
 0x154   : > { %1211 = vmatmul.bf16.gmra.mxu2 %v1021_v19  ;;  %1986 = vmatpush.bf16.msra.mxu1 %v2814_v62 }
 0x155   : > { %1317 = vmatmul.bf16.gmra.mxu3 %v3534_v23 }
 0x158   : > { %1987 = vmatpush.bf16.msra.mxu1 %v2813_v56 }
 0x15b   : > { %1139 = vmatmul.bf16.gmra.mxu1 %v1050_v50 }
 0x15c   : > { %1431 = vmatmul.bf16.gmra.mxu0 %v1346_v41  ;;  %1988 = vmatpush.bf16.msra.mxu1 %v2812_v9 }
 0x160   : > { %1989 = vmatpush.bf16.msra.mxu1 %v2811_v4 }
 0x164   : > { %1216 = vmatmul.bf16.gmra.mxu2 %v1022_v1  ;;  %1990 = vmatpush.bf16.msra.mxu1 %v2810_v30 }
 0x165   : > { %1322 = vmatmul.bf16.gmra.mxu3 %v3555_v40 }
 0x168   : > { %1991 = vmatpush.bf16.msra.mxu1 %v2809_v54 }
 0x16b   : > { %1535 = vmatmul.bf16.vlgmr.msrb.gmra.mxu1 %v1458_v18 }
 0x16c   : > { %1436 = vmatmul.bf16.gmra.mxu0 %v1347_v52 }
 0x174   : > { %1649 = vmatmul.bf16.vlgmr.msrb.gmra.mxu2 %v1572_v3 }
 0x175   : > { %1764 = vmatmul.bf16.vlgmr.msrb.gmra.mxu3 %v3478_v7 }
 0x17b   : > { %1540 = vmatmul.bf16.gmra.mxu1 %v1459_v63 }
 0x17c   : > { %1878 = vmatmul.bf16.vlgmr.msrb.gmra.mxu0 %v3442_v5  ;;  %v1574_v5 = vpack.c.bf16 %v1228_v59, %v1227_v27 }
 0x184   : > { %1654 = vmatmul.bf16.gmra.mxu2 %v1573_v37 }
 0x185   : > { %1769 = vmatmul.bf16.gmra.mxu3 %v1021_v19 }
 0x18b   : > { %1545 = vmatmul.bf16.gmra.mxu1 %v1460_v53  ;;  %v2730_v53 = vld [vmem:[%s2930_s27 + $0x1b0] sm:$0xff] }
 0x18c   : > { %1883 = vmatmul.bf16.gmra.mxu0 %v3516_v17  ;;  %v2029_v12 = vpack.c.bf16 %v2731_v39, %v2730_v53 }
 0x194   : > { %1659 = vmatmul.bf16.gmra.mxu2 %v1574_v5 }
 0x195   : > { %1774 = vmatmul.bf16.gmra.mxu3 %v1022_v1 }
 0x19b   : > { %1550 = vmatmul.bf16.gmra.mxu1 %v1461_v34  ;;  %v2735_v34 = vld [vmem:[%s2930_s27 + $0x200] sm:$0xff] }
 0x19c   : > { %1888 = vmatmul.bf16.gmra.mxu0 %v1050_v50  ;;  %v2031_v24 = vpack.c.bf16 %v2735_v34, %v2734_v0 }
 0x1a4   : > { %1664 = vmatmul.bf16.gmra.mxu2 %v1575_v20 }
 0x1a5   : > { %1779 = vmatmul.bf16.gmra.mxu3 %v1690_v42 }
 0x1a8   : > { %v1125_v14 = vpop.f32.mrf.mxu1 }
 0x1ab   : > { %1992 = vmatmul.bf16.vlgmr.msra.gmra.mxu1 %v3482_v51  ;;  %v2030_v51 = vpack.c.bf16 %v2733_v36, %v2732_v61 }
 0x1ac   : > { %1893 = vmatmul.bf16.gmra.mxu0 %v1804_v38 }
 0x1b0   : > { %v1127_v13 = vpop.f32.mrf.mxu1 }
 0x1b4   : > { %2738 = vmatmul.msk.bf16.vlgmr.msra.gmra.mxu2 %vm394_vm1, %v2029_v12 }
 0x1b6   : > { %v1202_v57 = vpop.f32.mrf.mxu2 }
 0x1b7   : > { %v3597_v7 = vadd.f32 %v1202_v57, %v1125_v14  ;;  %v1308_v31 = vpop.f32.mrf.mxu3 }
 0x1b8   : > { %v1130_v25 = vpop.f32.mrf.mxu1 }
 0x1b9   : > { %v1422_v17 = vpop.f32.mrf.mxu0 }
 0x1bb   : > { %1997 = vmatmul.bf16.gmra.mxu1 %v3534_v23  ;;  %v1918_v23 = vpack.c.bf16 %v1914_v16, %v1571_v48 }
 0x1be   : > { %v1204_v6 = vpop.f32.mrf.mxu2 }
 0x1bf   : > { %v3602_v49 = vadd.f32 %v1204_v6, %v1127_v13  ;;  %v1310_v10 = vpop.f32.mrf.mxu3  ;;  %v1328_v13 = vadd.f32 %v1308_v31, %v3597_v7 }
 0x1c0   : > { %v1132_v8 = vpop.f32.mrf.mxu1 }
 0x1c1   : > { %v1424_v19 = vpop.f32.mrf.mxu0  ;;  %v1442_v61 = vadd.f32 %v1422_v17, %v1328_v13 }
 0x1c4   : > { %2739 = vmatmul.msk.bf16.gmra.mxu2 %vm394_vm1, %v2030_v51 }
 0x1c7   : > { %v1207_v28 = vpop.f32.mrf.mxu2 }
 0x1c8   : > { %v3605_v32 = vadd.f32 %v1207_v28, %v1130_v25  ;;  %v1135_v43 = vpop.f32.mrf.mxu1  ;;  %v1313_v45 = vpop.f32.mrf.mxu3 }
 0x1c9   : > { %v1427_v50 = vpop.f32.mrf.mxu0 }
 0x1ca   : > { %v1330_v7 = vadd.f32 %v1313_v45, %v3605_v32 }
 0x1cb   : > { %2002 = vmatmul.bf16.gmra.mxu1 %v3555_v40 }
 0x1cf   : > { %v1209_v47 = vpop.f32.mrf.mxu2 }
 0x1d0   : > { %v3610_v46 = vadd.f32 %v1209_v47, %v1132_v8  ;;  %v1137_v26 = vpop.f32.mrf.mxu1  ;;  %v1315_v59 = vpop.f32.mrf.mxu3  ;;  %v1329_v8 = vadd.f32 %v1310_v10, %v3602_v49  ;;  %v3664_v49 = vld [vmem:[%s3759_s6] ss:$0 sm:$0xff]  ;;  %v1444_v10 = vadd.f32 %v1427_v50, %v1330_v7 }
 0x1d1   : > { %v3622_v1 = vpop.f32.mrf.mxu0 }
 0x1d2   : > { %v1443_v34 = vadd.f32 %v1424_v19, %v1329_v8 }
 0x1d4   : > { %2740 = vmatmul.msk.bf16.gmra.mxu2 %vm394_vm1, %v2031_v24 }
 0x1d7   : > { %v1212_v11 = vpop.f32.mrf.mxu2 }
 0x1d8   : > { %v3613_v2 = vadd.f32 %v1212_v11, %v1135_v43  ;;  %v1140_v27 = vpop.f32.mrf.mxu1  ;;  %v3626_v52 = vpop.f32.mrf.mxu3 }
 0x1d9   : > { %v3628_v56 = vpop.f32.mrf.mxu0 }
 0x1db   : > { %2007 = vmatmul.bf16.gmra.mxu1 %v1918_v23 }
 0x1df   : > { %v1214_v33 = vpop.f32.mrf.mxu2 }
 0x1e0   : > { %v3617_v44 = vadd.f32 %v1214_v33, %v1137_v26  ;;  %v1142_v41 = vpop.f32.mrf.mxu1  ;;  %v3630_v9 = vpop.f32.mrf.mxu3  ;;  %v3676_v33 = vld [vmem:[%s3760_s7] ss:$0 sm:$0xff] }
 0x1e1   : > { %v3632_v37 = vpop.f32.mrf.mxu0 }
 0x1e4   : > { %2741 = vmatmul.msk.bf16.gmra.mxu2 %vm394_vm1, %v2032_v15  ;;  %v3682_v15 = vld [vmem:[%s3762_s9] ss:$0 sm:$0xff] }
 0x1e7   : > { %v1217_v35 = vpop.f32.mrf.mxu2 }
 0x1e8   : > { %v3620_v55 = vadd.f32 %v1217_v35, %v1140_v27  ;;  %v1536_v58 = vpop.f32.mrf.mxu1  ;;  %v3634_v54 = vpop.f32.mrf.mxu3 }
 0x1e9   : > { %v3638_v48 = vpop.f32.mrf.mxu0  ;;  %v1556_v36 = vadd.f32 %v1536_v58, %v1442_v61 }
 0x1ef   : > { %v1219_v40 = vpop.f32.mrf.mxu2 }
 0x1f0   : > { %v3624_v62 = vadd.f32 %v1219_v40, %v1142_v41  ;;  %v1538_v21 = vpop.f32.mrf.mxu1  ;;  %v3642_v60 = vpop.f32.mrf.mxu3  ;;  %v1331_v41 = vadd.f32 %v1315_v59, %v3610_v46 }
 0x1f1   : > { %v3644_v14 = vpop.f32.mrf.mxu0  ;;  %v1557_v24 = vadd.f32 %v1538_v21, %v1443_v34 }
 0x1f7   : > { %v1650_v18 = vpop.f32.mrf.mxu2 }
 0x1f8   : > { %v1541_v3 = vpop.f32.mrf.mxu1  ;;  %v1765_v39 = vpop.f32.mrf.mxu3  ;;  %v1670_v28 = vadd.f32 %v1650_v18, %v1556_v36 }
 0x1f9   : > { %v1879_v57 = vpop.f32.mrf.mxu0  ;;  %v1558_v32 = vadd.f32 %v1541_v3, %v1444_v10 }
 0x1fa   : > { %v1785_v47 = vadd.f32 %v1765_v39, %v1670_v28  ;;  %v1445_v39 = vadd.f32 %v3622_v1, %v1331_v41 }
 0x1fc   : > { %v1899_v31 = vadd.f32 %v1879_v57, %v1785_v47 }
 0x1ff   : > { %v1652_v63 = vpop.f32.mrf.mxu2 }
 0x200   : > { %v1543_v4 = vpop.f32.mrf.mxu1  ;;  %v1767_v6 = vpop.f32.mrf.mxu3  ;;  %v1671_v17 = vadd.f32 %v1652_v63, %v1557_v24 }
 0x201   : > { %v1881_v0 = vpop.f32.mrf.mxu0  ;;  %v1559_v46 = vadd.f32 %v1543_v4, %v1445_v39 }
 0x202   : > { %v1786_v19 = vadd.f32 %v1767_v6, %v1671_v17  ;;  %v1332_v6 = vadd.f32 %v3626_v52, %v3613_v2 }
 0x204   : > { %v1900_v50 = vadd.f32 %v1881_v0, %v1786_v19  ;;  %v1446_v47 = vadd.f32 %v3628_v56, %v1332_v6 }
 0x207   : > { %v1655_v30 = vpop.f32.mrf.mxu2 }
 0x208   : > { %v3636_v5 = vpop.f32.mrf.mxu1  ;;  %v1770_v11 = vpop.f32.mrf.mxu3  ;;  %v1672_v35 = vadd.f32 %v1655_v30, %v1558_v32 }
 0x209   : > { %v1884_v23 = vpop.f32.mrf.mxu0  ;;  %v1560_v17 = vadd.f32 %v3636_v5, %v1446_v47 }
 0x20a   : > { %v1787_v13 = vadd.f32 %v1770_v11, %v1672_v35  ;;  %v1333_v11 = vadd.f32 %v3630_v9, %v3617_v44 }
 0x20c   : > { %v1901_v8 = vadd.f32 %v1884_v23, %v1787_v13 }
 0x20f   : > { %v1657_v20 = vpop.f32.mrf.mxu2 }
 0x210   : > { %v3640_v42 = vpop.f32.mrf.mxu1  ;;  %v1772_v63 = vpop.f32.mrf.mxu3  ;;  %v1673_v28 = vadd.f32 %v1657_v20, %v1559_v46 }
 0x211   : > { %v1886_v59 = vpop.f32.mrf.mxu0 }
 0x212   : > { %v1788_v24 = vadd.f32 %v1772_v63, %v1673_v28 }
 0x217   : > { %v3646_v38 = vpop.f32.mrf.mxu2 }
 0x218   : > { %v3648_v53 = vpop.f32.mrf.mxu1 }
 0x219   : > { %v1889_v10 = vpop.f32.mrf.mxu0 }
 0x21f   : > { %v3650_v12 = vpop.f32.mrf.mxu2 }
 0x220   : > { %v3653_v25 = vpop.f32.mrf.mxu1 }
 0x227   : > { %v3655_v51 = vpop.f32.mrf.mxu2 }
 0x228   : > { %v1993_v43 = vpop.f32.mrf.mxu1 }
 0x229   : > { %v2013_v27 = vadd.f32 %v1993_v43, %v1899_v31  ;;  %v1775_v31 = vpop.f32.mrf.mxu3 }
 0x22b   : > { %v2106_v29 = vmul.f32 %v3664_v49, %v2013_v27  ;;  %v1674_v27 = vadd.f32 %v3646_v38, %v1560_v17 }
 0x22d   : > { %v2118_v21 = vadd.f32 %v3676_v33, %v2106_v29  ;;  %v1447_v29 = vadd.f32 %v3632_v37, %v1333_v11  ;;  %v1891_v37 = vpop.f32.mrf.mxu0 }
 0x22f   : > { %v3658_v26 = vpop.f32.mrf.mxu2  ;;  %v1561_v44 = vadd.f32 %v3640_v42, %v1447_v29 }
 0x230   : > { %v1995_v16 = vpop.f32.mrf.mxu1 }
 0x231   : > { %v2014_v3 = vadd.f32 %v1995_v16, %v1900_v50  ;;  %v1902_v16 = vadd.f32 %v1886_v59, %v1788_v24  ;;  %v1777_v50 = vpop.f32.mrf.mxu3 }
 0x233   : > { %v2107_v61 = vmul.f32 %v3664_v49, %v2014_v3 }
 0x235   : > { %v2119_v0 = vadd.f32 %v3676_v33, %v2107_v61 }
 0x237   : > { %v2058_v45 = vpop.f32.mrf.mxu2 }
 0x238   : > { %v2082_v58 = vmul.f32 %v3670_v22, %v2058_v45  ;;  %v1998_v40 = vpop.f32.mrf.mxu1  ;;  %v1789_v45 = vadd.f32 %v1775_v31, %v1674_v27 }
 0x239   : > { %v2015_v4 = vadd.f32 %v1998_v40, %v1901_v8  ;;  %v1780_v8 = vpop.f32.mrf.mxu3 }
 0x23a   : > { %v2094_v18 = vadd.f32 %v3682_v15, %v2082_v58  ;;  %v1334_v58 = vadd.f32 %v3634_v54, %v3620_v55  ;;  %v1903_v40 = vadd.f32 %v1889_v10, %v1789_v45 }
 0x23b   : > { %v2108_v52 = vmul.f32 %v3664_v49, %v2015_v4 }
 0x23c   : > { %v2126_v57 = vadd.f32 %v2118_v21, %v2094_v18  ;;  %v1675_v21 = vadd.f32 %v3650_v12, %v1561_v44  ;;  %v1448_v13 = vadd.f32 %v3638_v48, %v1334_v58 }
 0x23d   : > { %v2120_v23 = vadd.f32 %v3676_v33, %v2108_v52 }
 0x23e   : > { %v2134_v30 = vmax.f32 %v2126_v57, 0.0  ;;  %v1790_v57 = vadd.f32 %v1777_v50, %v1675_v21  ;;  %v1562_v55 = vadd.f32 %v3648_v53, %v1448_v13 }
 0x23f   : > { %v2060_v36 = vpop.f32.mrf.mxu2 }
 0x240   : > { %2142 = vst [vmem:[%s3692_s28] sm:$0xff] %v2134_v30  ;;  %v2083_v1 = vmul.f32 %v3670_v22, %v2060_v36  ;;  %v2000_v43 = vpop.f32.mrf.mxu1  ;;  %v1335_v30 = vadd.f32 %v3642_v60, %v3624_v62  ;;  %v1904_v61 = vadd.f32 %v1891_v37, %v1790_v57  ;;  %v1676_v36 = vadd.f32 %v3655_v51, %v1562_v55 }
 0x241   : > { %v2016_v32 = vadd.f32 %v2000_v43, %v1902_v16  ;;  %v1782_v52 = vpop.f32.mrf.mxu3 }
 0x242   : > { %v2095_v34 = vadd.f32 %v3682_v15, %v2083_v1  ;;  %v1449_v1 = vadd.f32 %v3644_v14, %v1335_v30  ;;  %v1791_v43 = vadd.f32 %v1780_v8, %v1676_v36 }
 0x243   : > { %v2109_v38 = vmul.f32 %v3664_v49, %v2016_v32 }
 0x244   : > { %v2127_v7 = vadd.f32 %v2119_v0, %v2095_v34  ;;  %v1894_v0 = vpop.f32.mrf.mxu0  ;;  %v1563_v62 = vadd.f32 %v3653_v25, %v1449_v1 }
 0x245   : > { %v2121_v3 = vadd.f32 %v3676_v33, %v2109_v38  ;;  %v1905_v24 = vadd.f32 %v1894_v0, %v1791_v43 }
 0x246   : > { %v2135_v2 = vmax.f32 %v2127_v7, 0.0  ;;  %v1677_v7 = vadd.f32 %v3658_v26, %v1563_v62 }
 0x247   : > { %v2063_v20 = vpop.f32.mrf.mxu2 }
 0x248   : > { %2143 = vst [vmem:[%s3692_s28 + $0x8] sm:$0xff] %v2135_v2  ;;  %v2084_v19 = vmul.f32 %v3670_v22, %v2063_v20  ;;  %v2003_v56 = vpop.f32.mrf.mxu1  ;;  %v1792_v20 = vadd.f32 %v1782_v52, %v1677_v7 }
 0x249   : > { %v2017_v63 = vadd.f32 %v2003_v56, %v1903_v40 }
 0x24a   : > { %v2096_v5 = vadd.f32 %v3682_v15, %v2084_v19 }
 0x24b   : > { %v2110_v12 = vmul.f32 %v3664_v49, %v2017_v63 }
 0x24c   : > { %v2128_v41 = vadd.f32 %v2120_v23, %v2096_v5  ;;  %v1896_v25 = vpop.f32.mrf.mxu0 }
 0x24d   : > { %v2122_v48 = vadd.f32 %v3676_v33, %v2110_v12  ;;  %v1906_v56 = vadd.f32 %v1896_v25, %v1792_v20 }
 0x24e   : > { %v2136_v9 = vmax.f32 %v2128_v41, 0.0 }
 0x24f   : > { %v2065_v35 = vpop.f32.mrf.mxu2 }
 0x250   : > { %2144 = vst [vmem:[%s3692_s28 + $0x10] sm:$0xff] %v2136_v9  ;;  %v2085_v18 = vmul.f32 %v3670_v22, %v2065_v35  ;;  %v2005_v39 = vpop.f32.mrf.mxu1 }
 0x251   : > { %v2018_v53 = vadd.f32 %v2005_v39, %v1904_v61 }
 0x252   : > { %v2097_v42 = vadd.f32 %v3682_v15, %v2085_v18 }
 0x253   : > { %v2111_v51 = vmul.f32 %v3664_v49, %v2018_v53 }
 0x254   : > { %v2129_v46 = vadd.f32 %v2121_v3, %v2097_v42 }
 0x255   : > { %v2123_v17 = vadd.f32 %v3676_v33, %v2111_v51 }
 0x256   : > { %v2137_v54 = vmax.f32 %v2129_v46, 0.0 }
 0x257   : > { %v2068_v59 = vpop.f32.mrf.mxu2 }
 0x258   : > { %2145 = vst [vmem:[%s3692_s28 + $0x18] sm:$0xff] %v2137_v54  ;;  %v2086_v6 = vmul.f32 %v3670_v22, %v2068_v59  ;;  %v2008_v4 = vpop.f32.mrf.mxu1 }
 0x259   : > { %v2019_v2 = vadd.f32 %v2008_v4, %v1905_v24 }
 0x25a   : > { %v2098_v28 = vadd.f32 %v3682_v15, %v2086_v6 }
 0x25b   : > { %v2112_v27 = vmul.f32 %v3664_v49, %v2019_v2 }
 0x25c   : > { %v2130_v34 = vadd.f32 %v2122_v48, %v2098_v28 }
 0x25d   : > { %v2124_v23 = vadd.f32 %v3676_v33, %v2112_v27 }
 0x25e   : > { %v2138_v60 = vmax.f32 %v2130_v34, 0.0 }
 0x25f   : > { %v2070_v47 = vpop.f32.mrf.mxu2 }
 0x260   : > { %2146 = vst [vmem:[%s3692_s28 + $0x20] sm:$0xff] %v2138_v60  ;;  %v2087_v31 = vmul.f32 %v3670_v22, %v2070_v47  ;;  %v2010_v19 = vpop.f32.mrf.mxu1 }
 0x261   : > { %v2020_v32 = vadd.f32 %v2010_v19, %v1906_v56 }
 0x262   : > { %v2099_v14 = vadd.f32 %v3682_v15, %v2087_v31 }
 0x263   : > { %v2113_v41 = vmul.f32 %v3664_v49, %v2020_v32 }
 0x264   : > { %v2131_v11 = vadd.f32 %v2123_v17, %v2099_v14 }
 0x265   : > { %v2125_v38 = vadd.f32 %v3676_v33, %v2113_v41 }
 0x266   : > { %v2139_v16 = vmax.f32 %v2131_v11, 0.0 }
 0x267   : > { %v2073_v10 = vpop.f32.mrf.mxu2 }
 0x268   : > { %2147 = vst [vmem:[%s3692_s28 + $0x28] sm:$0xff] %v2139_v16  ;;  %v2088_v26 = vmul.f32 %v3670_v22, %v2073_v10 }
 0x26a   : > { %v2100_v5 = vadd.f32 %v3682_v15, %v2088_v26 }
 0x26c   : > { %v2132_v29 = vadd.f32 %v2124_v23, %v2100_v5 }
 0x26e   : > { %v2140_v45 = vmax.f32 %v2132_v29, 0.0 }
 0x26f   : > { %v2075_v44 = vpop.f32.mrf.mxu2 }
 0x270   : > { %2148 = vst [vmem:[%s3692_s28 + $0x30] sm:$0xff] %v2140_v45  ;;  %v2089_v9 = vmul.f32 %v3670_v22, %v2075_v44 }
 0x272   : > { %v2101_v50 = vadd.f32 %v3682_v15, %v2089_v9 }
 0x274   : > { %v2133_v35 = vadd.f32 %v2125_v38, %v2101_v50 }
 0x276   : > { %v2141_v58 = vmax.f32 %v2133_v35, 0.0 }
 0x278   : > { %2149 = vst [vmem:[%s3692_s28 + $0x38] sm:$0xff] %v2141_v58 }
 0x279 PF: > { %s20_s13 = sadd.s32 1, %s2842_s13  }
 0x27a   : > { %p17_p5 = scmp.ge.s32.totalorder %s20_s13, 4  }
 0x27c   :  { %19 = sbr.rel (!%p17_p5) target bundleno = 1 (0x1), region = 113 }

</bundles_post_ra>
